<compile_context>
chip_gen: v6e
topology: v6e:2x2x1
jax: 0.10.0
libtpu: 0.0.40
codegen_flags: <defaults>
</compile_context>

<pallas_src>
import jax
import jax.numpy as jnp
import numpy as np
from jax.experimental import pallas as pl
from jax.experimental.pallas import tpu as pltpu  # noqa: F401

# ---------------- hyperparameters (small, consistent with the module) -------
VOCAB = 32
EMB = 16
HID = 16            # hidden_dim (per direction)
NLAYERS = 2
ATTN_UNIT = 16
ATTN_HOPS = 4
PAD_ID = 0
B, S = 4, 8


# ============================ fused Pallas kernel ============================
def _encoder_kernel(*refs):
    """Whole SelfAttentiveEncoder forward in one kernel.

    refs layout (inputs, then outputs):
      [0]  ids_col   (S*B, 1) int32  token ids, time-major rows (r = t*B + b)
      [1]  ids_quirk (B, S)   int32  ids in the torch `.view(B,1,S)` order (mask)
      [2]  emb       (V, E)   f32
      per layer l (l = 0..NLAYERS-1), at [3 + 4*l]:
           wf (In, 8H), wb (In, 8H), whh (2H, 8H), bias (1, 8H)
      then ws1t (2H, A), ws2 (hops, A)
      outputs: m (B, hops, 2H), alphas (B, hops, S)
    Fused gate column order: [i_f i_b | f_f f_b | g_f g_b | o_f o_b] so that
    cell/hidden state is one (B, 2H) = [fwd | bwd] tile.
    """
    ids_col_ref, ids_quirk_ref, emb_ref = refs[0], refs[1], refs[2]
    layer_refs = refs[3:3 + 4 * NLAYERS]
    ws1t_ref = refs[3 + 4 * NLAYERS]
    ws2_ref = refs[4 + 4 * NLAYERS]
    m_ref = refs[5 + 4 * NLAYERS]
    a_ref = refs[6 + 4 * NLAYERS]

    nb, ns = ids_quirk_ref.shape
    V, _E = emb_ref.shape
    H = layer_refs[2].shape[0] // 2               # whh: (2H, 8H)

    # ---- embedding lookup as a one-hot matmul (exact; MXU friendly) --------
    ids_col = ids_col_ref[...]                                            # (S*B, 1)
    iota_v = jax.lax.broadcasted_iota(jnp.int32, (ns * nb, V), 1)
    onehot = (ids_col == iota_v).astype(jnp.float32)                      # (S*B, V)
    x = jnp.dot(onehot, emb_ref[...], preferred_element_type=jnp.float32)  # (S*B, E)

    # ---- stacked bidirectional LSTM, fwd/bwd fused into 128-lane gates -----
    out = None
    for layer in range(NLAYERS):
        wf_ref, wb_ref, whh_ref, b_ref = layer_refs[4 * layer:4 * layer + 4]
        # Input projections for every timestep: hoisted off the serial path.
        pf = (jnp.dot(x, wf_ref[...], preferred_element_type=jnp.float32)
              + b_ref[...]).reshape(ns, nb, 8 * H)                        # (S, B, 8H)
        pb = jnp.dot(x, wb_ref[...],
                     preferred_element_type=jnp.float32).reshape(ns, nb, 8 * H)
        whh = whh_ref[...]                                                # (2H, 8H)
        h = jnp.zeros((nb, 2 * H), jnp.float32)                           # [h_fwd | h_bwd]
        c = jnp.zeros((nb, 2 * H), jnp.float32)                           # [c_fwd | c_bwd]
        hf_steps, hb_steps = [], []
        for j in range(ns):                 # fully unrolled (static trip count)
            g_in = pf[j] + pb[ns - 1 - j]                                 # (B, 8H)
            gates = g_in + jnp.dot(h, whh, preferred_element_type=jnp.float32)
            sg = jax.nn.sigmoid(gates)
            tg = jnp.tanh(gates)
            i_g = sg[:, 0 * H:2 * H]        # [i_fwd | i_bwd]
            f_g = sg[:, 2 * H:4 * H]
            g_g = tg[:, 4 * H:6 * H]
            o_g = sg[:, 6 * H:8 * H]
            c = f_g * c + i_g * g_g
            h = o_g * jnp.tanh(c)
            hf_steps.append(h[:, 0:H])      # fwd hidden at time j
            hb_steps.append(h[:, H:2 * H])  # bwd hidden at time (S-1-j)
        hf = jnp.stack(hf_steps, axis=0)                   # (S, B, H)
        hb = jnp.stack(hb_steps[::-1], axis=0)             # (S, B, H), time-aligned
        out = jnp.concatenate([hf, hb], axis=-1)           # (S, B, 2H)
        x = out.reshape(ns * nb, 2 * H)                    # next-layer input

    # ---- self-attention over the whole batch (single pass, no grid) --------
    ws1t = ws1t_ref[...]            # (2H, A)
    ws2 = ws2_ref[...]              # (hops, A)
    ids_q = ids_quirk_ref[...]      # (B, S)
    m_rows, a_rows = [], []
    for b in range(nb):
        outp_b = out[:, b, :]                                             # (S, 2H)
        hbar = jnp.tanh(jnp.dot(outp_b, ws1t,
                                preferred_element_type=jnp.float32))      # (S, A)
        # Scores directly in (hops, S) orientation: contract A of both operands.
        logits = jax.lax.dot_general(ws2, hbar, (((1,), (1,)), ((), ())),
                                     preferred_element_type=jnp.float32)  # (hops, S)
        mask = jnp.where(ids_q[b:b + 1, :] == PAD_ID, -10000.0, 0.0)      # (1, S)
        logits = logits + mask
        mx = jnp.max(logits, axis=-1, keepdims=True)
        e = jnp.exp(logits - mx)
        denom = jnp.sum(e, axis=-1, keepdims=True)
        alphas_b = e * pl.reciprocal(denom, approx=True)                  # (hops, S)
        m_rows.append(jnp.dot(alphas_b, outp_b,
                              preferred_element_type=jnp.float32))        # (hops, 2H)
        a_rows.append(alphas_b)
    m_ref[...] = jnp.stack(m_rows, axis=0)                                # (B, hops, 2H)
    a_ref[...] = jnp.stack(a_rows, axis=0)                                # (B, hops, S)


# ============================ wrapper ========================================
@jax.jit
def forward_pallas(fused, inp):
    B_, S_ = inp.shape
    hops = fused["ws2"].shape[0]
    two_h = fused["ws1t"].shape[0]

    ids_tm = inp.T                            # (S, B) time-major ids
    ids_col = ids_tm.reshape(S_ * B_, 1)      # row r = t*B + b  (embedding order)
    ids_quirk = ids_tm.reshape(B_, S_)        # torch `.view(B,1,S)` quirk, squeezed

    layer_args = []
    for (wf, wb, whh, bias) in fused["layers"]:
        layer_args.extend([wf, wb, whh, bias])

    m, alphas = pl.pallas_call(
        _encoder_kernel,
        out_shape=(jax.ShapeDtypeStruct((B_, hops, two_h), jnp.float32),
                   jax.ShapeDtypeStruct((B_, hops, S_), jnp.float32)),
    )(ids_col, ids_quirk, fused["emb"], *layer_args, fused["ws1t"], fused["ws2"])
    return m, alphas


# ============================ parameters =====================================
def init_params(key):
    def u(k, shape):
        return jax.random.uniform(k, shape, jnp.float32, -0.1, 0.1)

    keys = jax.random.split(key, 4 + NLAYERS * 2 * 4)
    params = {
        "emb": u(keys[0], (VOCAB, EMB)).at[PAD_ID].set(0.0),   # pad row zeroed (as in __init__)
        "ws1": u(keys[1], (ATTN_UNIT, 2 * HID)),               # torch Linear layout (out, in)
        "ws2": u(keys[2], (ATTN_HOPS, ATTN_UNIT)),
        "lstm": [],
    }
    ki = 4
    for layer in range(NLAYERS):
        in_dim = EMB if layer == 0 else 2 * HID
        layer_p = []
        for _direction in range(2):
            wih = u(keys[ki], (4 * HID, in_dim)); ki += 1
            whh = u(keys[ki], (4 * HID, HID)); ki += 1
            bih = u(keys[ki], (4 * HID,)); ki += 1
            bhh = u(keys[ki], (4 * HID,)); ki += 1
            layer_p.append((wih, whh, bih, bhh))
        params["lstm"].append(layer_p)
    return params


def fuse_params(params):
    """One-time re-layout of torch-style LSTM weights into the kernel layout.

    Fused gate column order (8H lanes): [i_f i_b | f_f f_b | g_f g_b | o_f o_b].
    This is parameter plumbing done once at init, not per-forward glue.
    """
    H = HID

    def place_cols(w_t, direction):          # w_t: (In, 4H), torch gate order i,f,g,o
        out = jnp.zeros((w_t.shape[0], 8 * H), jnp.float32)
        for g in range(4):
            c0 = g * 2 * H + direction * H
            out = out.at[:, c0:c0 + H].set(w_t[:, g * H:(g + 1) * H])
        return out

    def place_bias(bvec, direction):         # bvec: (4H,)
        out = jnp.zeros((8 * H,), jnp.float32)
        for g in range(4):
            c0 = g * 2 * H + direction * H
            out = out.at[c0:c0 + H].set(bvec[g * H:(g + 1) * H])
        return out

    fused = {"emb": params["emb"],
             "ws1t": params["ws1"].T,         # (2H, A)
             "ws2": params["ws2"],            # (hops, A)
             "layers": []}
    for (fwd, bwd) in params["lstm"]:
        wih_f, whh_f, bih_f, bhh_f = fwd
        wih_b, whh_b, bih_b, bhh_b = bwd
        wf = place_cols(wih_f.T, 0)                               # (In, 8H)
        wb = place_cols(wih_b.T, 1)                               # (In, 8H)
        whh = jnp.concatenate([place_cols(whh_f.T, 0),            # rows 0:H  <- h_fwd
                               place_cols(whh_b.T, 1)], axis=0)   # rows H:2H <- h_bwd
        bias = (place_bias(bih_f + bhh_f, 0)
                + place_bias(bih_b + bhh_b, 1))[None, :]          # (1, 8H)
        fused["layers"].append((wf, wb, whh, bias))
    return fused


# ============================ pure-JAX reference =============================
def forward_ref(params, inp):
    B_, S_ = inp.shape

    def lstm_dir_ref(x, wih, whh, bih, bhh):
        H = whh.shape[1]

        def step(carry, x_t):
            h, c = carry
            gates = x_t @ wih.T + h @ whh.T + bih + bhh
            i, f, g, o = jnp.split(gates, 4, axis=-1)
            c = jax.nn.sigmoid(f) * c + jax.nn.sigmoid(i) * jnp.tanh(g)
            h = jax.nn.sigmoid(o) * jnp.tanh(c)
            return (h, c), h

        init = (jnp.zeros((x.shape[1], H)), jnp.zeros((x.shape[1], H)))
        _, hs = jax.lax.scan(step, init, x)
        return hs

    x = params["emb"][inp.T]
    for layer_p in params["lstm"]:
        (wih_f, whh_f, bih_f, bhh_f), (wih_b, whh_b, bih_b, bhh_b) = layer_p
        h_f = lstm_dir_ref(x, wih_f, whh_f, bih_f, bhh_f)
        h_b = lstm_dir_ref(x[::-1], wih_b, whh_b, bih_b, bhh_b)[::-1]
        x = jnp.concatenate([h_f, h_b], axis=-1)
    outp = jnp.transpose(x, (1, 0, 2))

    transformed = jnp.transpose(inp).reshape(B_, 1, S_)      # torch .view(B,1,S) quirk
    concatenated = jnp.tile(transformed, (1, ATTN_HOPS, 1))
    mask_add = -10000.0 * (concatenated == PAD_ID).astype(jnp.float32)

    hbar = jnp.tanh(outp.reshape(-1, 2 * HID) @ params["ws1"].T)
    scores = (hbar @ params["ws2"].T).reshape(B_, S_, ATTN_HOPS)
    alphas = jnp.transpose(scores, (0, 2, 1)) + mask_add
    alphas = jax.nn.softmax(alphas.reshape(-1, S_), axis=-1).reshape(B_, ATTN_HOPS, S_)
    m = jnp.einsum("bhs,bsd->bhd", alphas, outp)
    return m, alphas


# ============================ main ===========================================
if __name__ == "__main__":
    key = jax.random.PRNGKey(0)
    kp, kinp = jax.random.split(key)
    params = init_params(kp)
    fused = fuse_params(params)     # one-time kernel-layout weights

    inp = jax.random.randint(kinp, (B, S), 0, VOCAB, dtype=jnp.int32)
    inp = inp.at[:, -2:].set(PAD_ID)   # introduce some padding tokens

    m, alphas = forward_pallas(fused, inp)
    jax.block_until_ready((m, alphas))

    m_ref_v, a_ref_v = forward_ref(params, inp)
    np.testing.assert_allclose(np.asarray(m), np.asarray(m_ref_v), rtol=2e-3, atol=2e-3)
    np.testing.assert_allclose(np.asarray(alphas), np.asarray(a_ref_v), rtol=2e-3, atol=2e-3)

    print("KERNEL_OK")
</pallas_src>

<mosaic_0001>
module attributes {stable_mosaic.version = 11 : i64} {
  func.func @_encoder_kernel(%arg0: memref<32x1xi32, #tpu.memory_space<vmem>>, %arg1: memref<4x8xi32, #tpu.memory_space<vmem>>, %arg2: memref<32x16xf32, #tpu.memory_space<vmem>>, %arg3: memref<16x128xf32, #tpu.memory_space<vmem>>, %arg4: memref<16x128xf32, #tpu.memory_space<vmem>>, %arg5: memref<32x128xf32, #tpu.memory_space<vmem>>, %arg6: memref<1x128xf32, #tpu.memory_space<vmem>>, %arg7: memref<32x128xf32, #tpu.memory_space<vmem>>, %arg8: memref<32x128xf32, #tpu.memory_space<vmem>>, %arg9: memref<32x128xf32, #tpu.memory_space<vmem>>, %arg10: memref<1x128xf32, #tpu.memory_space<vmem>>, %arg11: memref<32x16xf32, #tpu.memory_space<vmem>>, %arg12: memref<4x16xf32, #tpu.memory_space<vmem>>, %arg13: memref<4x4x32xf32, #tpu.memory_space<vmem>>, %arg14: memref<4x4x8xf32, #tpu.memory_space<vmem>>) attributes {dimension_semantics = [], scalar_prefetch = 0 : i64, scratch_operands = 0 : i64, tpu.core_type = #tpu.core_type<tc>} {
    %c0 = arith.constant 0 : index
    %c0_0 = arith.constant 0 : index
    %0 = vector.load %arg0[%c0, %c0_0] : memref<32x1xi32, #tpu.memory_space<vmem>>, vector<32x1xi32>
    %1 = tpu.iota {dimensions = array<i32: 1>} : vector<32x32xi32>
    %2 = vector.broadcast %0 : vector<32x1xi32> to vector<32x32xi32>
    %3 = arith.cmpi eq, %2, %1 : vector<32x32xi32>
    %4 = arith.extui %3 : vector<32x32xi1> to vector<32x32xi32>
    %5 = arith.sitofp %4 : vector<32x32xi32> to vector<32x32xf32>
    %c0_1 = arith.constant 0 : index
    %c0_2 = arith.constant 0 : index
    %6 = vector.load %arg2[%c0_1, %c0_2] : memref<32x16xf32, #tpu.memory_space<vmem>>, vector<32x16xf32>
    %cst = arith.constant dense<0.000000e+00> : vector<32x16xf32>
    %7 = tpu.matmul %5, %6, %cst {dimension_numbers = #tpu.dot_dimension_numbers<[1], [0], [0], [1], [0, 0, 1, 1], [], []>} : vector<32x32xf32>, vector<32x16xf32>, vector<32x16xf32> -> vector<32x16xf32>
    %c0_3 = arith.constant 0 : index
    %c0_4 = arith.constant 0 : index
    %8 = vector.load %arg3[%c0_3, %c0_4] : memref<16x128xf32, #tpu.memory_space<vmem>>, vector<16x128xf32>
    %cst_5 = arith.constant dense<0.000000e+00> : vector<32x128xf32>
    %9 = tpu.matmul %7, %8, %cst_5 {dimension_numbers = #tpu.dot_dimension_numbers<[1], [0], [0], [1], [0, 0, 1, 1], [], []>} : vector<32x16xf32>, vector<16x128xf32>, vector<32x128xf32> -> vector<32x128xf32>
    %c0_6 = arith.constant 0 : index
    %c0_7 = arith.constant 0 : index
    %10 = vector.load %arg6[%c0_6, %c0_7] : memref<1x128xf32, #tpu.memory_space<vmem>>, vector<1x128xf32>
    %11 = vector.broadcast %10 : vector<1x128xf32> to vector<32x128xf32>
    %12 = arith.addf %9, %11 : vector<32x128xf32>
    %13 = vector.shape_cast %12 : vector<32x128xf32> to vector<8x4x128xf32>
    %c0_8 = arith.constant 0 : index
    %c0_9 = arith.constant 0 : index
    %14 = vector.load %arg4[%c0_8, %c0_9] : memref<16x128xf32, #tpu.memory_space<vmem>>, vector<16x128xf32>
    %cst_10 = arith.constant dense<0.000000e+00> : vector<32x128xf32>
    %15 = tpu.matmul %7, %14, %cst_10 {dimension_numbers = #tpu.dot_dimension_numbers<[1], [0], [0], [1], [0, 0, 1, 1], [], []>} : vector<32x16xf32>, vector<16x128xf32>, vector<32x128xf32> -> vector<32x128xf32>
    %16 = vector.shape_cast %15 : vector<32x128xf32> to vector<8x4x128xf32>
    %c0_11 = arith.constant 0 : index
    %c0_12 = arith.constant 0 : index
    %17 = vector.load %arg5[%c0_11, %c0_12] : memref<32x128xf32, #tpu.memory_space<vmem>>, vector<32x128xf32>
    %cst_13 = arith.constant 0.000000e+00 : f32
    %18 = vector.broadcast %cst_13 : f32 to vector<4x32xf32>
    %cst_14 = arith.constant 0.000000e+00 : f32
    %19 = vector.broadcast %cst_14 : f32 to vector<4x32xf32>
    %20 = vector.extract_strided_slice %13 {offsets = [0, 0, 0], sizes = [1, 4, 128], strides = [1, 1, 1]} : vector<8x4x128xf32> to vector<1x4x128xf32>
    %21 = vector.shape_cast %20 : vector<1x4x128xf32> to vector<4x128xf32>
    %22 = vector.extract_strided_slice %16 {offsets = [7, 0, 0], sizes = [1, 4, 128], strides = [1, 1, 1]} : vector<8x4x128xf32> to vector<1x4x128xf32>
    %23 = vector.shape_cast %22 : vector<1x4x128xf32> to vector<4x128xf32>
    %24 = arith.addf %21, %23 : vector<4x128xf32>
    %cst_15 = arith.constant dense<0.000000e+00> : vector<4x128xf32>
    %25 = tpu.matmul %18, %17, %cst_15 {dimension_numbers = #tpu.dot_dimension_numbers<[1], [0], [0], [1], [0, 0, 1, 1], [], []>} : vector<4x32xf32>, vector<32x128xf32>, vector<4x128xf32> -> vector<4x128xf32>
    %26 = arith.addf %24, %25 : vector<4x128xf32>
    %27 = arith.negf %26 : vector<4x128xf32>
    %28 = math.exp %27 : vector<4x128xf32>
    %cst_16 = arith.constant 1.000000e+00 : f32
    %29 = vector.broadcast %cst_16 : f32 to vector<4x128xf32>
    %30 = arith.addf %29, %28 : vector<4x128xf32>
    %31 = arith.divf %29, %30 : vector<4x128xf32>
    %32 = math.tanh %26 : vector<4x128xf32>
    %33 = vector.extract_strided_slice %31 {offsets = [0, 0], sizes = [4, 32], strides = [1, 1]} : vector<4x128xf32> to vector<4x32xf32>
    %34 = vector.extract_strided_slice %31 {offsets = [0, 32], sizes = [4, 32], strides = [1, 1]} : vector<4x128xf32> to vector<4x32xf32>
    %35 = vector.extract_strided_slice %32 {offsets = [0, 64], sizes = [4, 32], strides = [1, 1]} : vector<4x128xf32> to vector<4x32xf32>
    %36 = vector.extract_strided_slice %31 {offsets = [0, 96], sizes = [4, 32], strides = [1, 1]} : vector<4x128xf32> to vector<4x32xf32>
    %37 = arith.mulf %34, %19 : vector<4x32xf32>
    %38 = arith.mulf %33, %35 : vector<4x32xf32>
    %39 = arith.addf %37, %38 : vector<4x32xf32>
    %40 = math.tanh %39 : vector<4x32xf32>
    %41 = arith.mulf %36, %40 : vector<4x32xf32>
    %42 = vector.extract_strided_slice %41 {offsets = [0, 0], sizes = [4, 16], strides = [1, 1]} : vector<4x32xf32> to vector<4x16xf32>
    %43 = vector.extract_strided_slice %41 {offsets = [0, 16], sizes = [4, 16], strides = [1, 1]} : vector<4x32xf32> to vector<4x16xf32>
    %44 = vector.extract_strided_slice %13 {offsets = [1, 0, 0], sizes = [1, 4, 128], strides = [1, 1, 1]} : vector<8x4x128xf32> to vector<1x4x128xf32>
    %45 = vector.shape_cast %44 : vector<1x4x128xf32> to vector<4x128xf32>
    %46 = vector.extract_strided_slice %16 {offsets = [6, 0, 0], sizes = [1, 4, 128], strides = [1, 1, 1]} : vector<8x4x128xf32> to vector<1x4x128xf32>
    %47 = vector.shape_cast %46 : vector<1x4x128xf32> to vector<4x128xf32>
    %48 = arith.addf %45, %47 : vector<4x128xf32>
    %cst_17 = arith.constant dense<0.000000e+00> : vector<4x128xf32>
    %49 = tpu.matmul %41, %17, %cst_17 {dimension_numbers = #tpu.dot_dimension_numbers<[1], [0], [0], [1], [0, 0, 1, 1], [], []>} : vector<4x32xf32>, vector<32x128xf32>, vector<4x128xf32> -> vector<4x128xf32>
    %50 = arith.addf %48, %49 : vector<4x128xf32>
    %51 = arith.negf %50 : vector<4x128xf32>
    %52 = math.exp %51 : vector<4x128xf32>
    %cst_18 = arith.constant 1.000000e+00 : f32
    %53 = vector.broadcast %cst_18 : f32 to vector<4x128xf32>
    %54 = arith.addf %53, %52 : vector<4x128xf32>
    %55 = arith.divf %53, %54 : vector<4x128xf32>
    %56 = math.tanh %50 : vector<4x128xf32>
    %57 = vector.extract_strided_slice %55 {offsets = [0, 0], sizes = [4, 32], strides = [1, 1]} : vector<4x128xf32> to vector<4x32xf32>
    %58 = vector.extract_strided_slice %55 {offsets = [0, 32], sizes = [4, 32], strides = [1, 1]} : vector<4x128xf32> to vector<4x32xf32>
    %59 = vector.extract_strided_slice %56 {offsets = [0, 64], sizes = [4, 32], strides = [1, 1]} : vector<4x128xf32> to vector<4x32xf32>
    %60 = vector.extract_strided_slice %55 {offsets = [0, 96], sizes = [4, 32], strides = [1, 1]} : vector<4x128xf32> to vector<4x32xf32>
    %61 = arith.mulf %58, %39 : vector<4x32xf32>
    %62 = arith.mulf %57, %59 : vector<4x32xf32>
    %63 = arith.addf %61, %62 : vector<4x32xf32>
    %64 = math.tanh %63 : vector<4x32xf32>
    %65 = arith.mulf %60, %64 : vector<4x32xf32>
    %66 = vector.extract_strided_slice %65 {offsets = [0, 0], sizes = [4, 16], strides = [1, 1]} : vector<4x32xf32> to vector<4x16xf32>
    %67 = vector.extract_strided_slice %65 {offsets = [0, 16], sizes = [4, 16], strides = [1, 1]} : vector<4x32xf32> to vector<4x16xf32>
    %68 = vector.extract_strided_slice %13 {offsets = [2, 0, 0], sizes = [1, 4, 128], strides = [1, 1, 1]} : vector<8x4x128xf32> to vector<1x4x128xf32>
    %69 = vector.shape_cast %68 : vector<1x4x128xf32> to vector<4x128xf32>
    %70 = vector.extract_strided_slice %16 {offsets = [5, 0, 0], sizes = [1, 4, 128], strides = [1, 1, 1]} : vector<8x4x128xf32> to vector<1x4x128xf32>
    %71 = vector.shape_cast %70 : vector<1x4x128xf32> to vector<4x128xf32>
    %72 = arith.addf %69, %71 : vector<4x128xf32>
    %cst_19 = arith.constant dense<0.000000e+00> : vector<4x128xf32>
    %73 = tpu.matmul %65, %17, %cst_19 {dimension_numbers = #tpu.dot_dimension_numbers<[1], [0], [0], [1], [0, 0, 1, 1], [], []>} : vector<4x32xf32>, vector<32x128xf32>, vector<4x128xf32> -> vector<4x128xf32>
    %74 = arith.addf %72, %73 : vector<4x128xf32>
    %75 = arith.negf %74 : vector<4x128xf32>
    %76 = math.exp %75 : vector<4x128xf32>
    %cst_20 = arith.constant 1.000000e+00 : f32
    %77 = vector.broadcast %cst_20 : f32 to vector<4x128xf32>
    %78 = arith.addf %77, %76 : vector<4x128xf32>
    %79 = arith.divf %77, %78 : vector<4x128xf32>
    %80 = math.tanh %74 : vector<4x128xf32>
    %81 = vector.extract_strided_slice %79 {offsets = [0, 0], sizes = [4, 32], strides = [1, 1]} : vector<4x128xf32> to vector<4x32xf32>
    %82 = vector.extract_strided_slice %79 {offsets = [0, 32], sizes = [4, 32], strides = [1, 1]} : vector<4x128xf32> to vector<4x32xf32>
    %83 = vector.extract_strided_slice %80 {offsets = [0, 64], sizes = [4, 32], strides = [1, 1]} : vector<4x128xf32> to vector<4x32xf32>
    %84 = vector.extract_strided_slice %79 {offsets = [0, 96], sizes = [4, 32], strides = [1, 1]} : vector<4x128xf32> to vector<4x32xf32>
    %85 = arith.mulf %82, %63 : vector<4x32xf32>
    %86 = arith.mulf %81, %83 : vector<4x32xf32>
    %87 = arith.addf %85, %86 : vector<4x32xf32>
    %88 = math.tanh %87 : vector<4x32xf32>
    %89 = arith.mulf %84, %88 : vector<4x32xf32>
    %90 = vector.extract_strided_slice %89 {offsets = [0, 0], sizes = [4, 16], strides = [1, 1]} : vector<4x32xf32> to vector<4x16xf32>
    %91 = vector.extract_strided_slice %89 {offsets = [0, 16], sizes = [4, 16], strides = [1, 1]} : vector<4x32xf32> to vector<4x16xf32>
    %92 = vector.extract_strided_slice %13 {offsets = [3, 0, 0], sizes = [1, 4, 128], strides = [1, 1, 1]} : vector<8x4x128xf32> to vector<1x4x128xf32>
    %93 = vector.shape_cast %92 : vector<1x4x128xf32> to vector<4x128xf32>
    %94 = vector.extract_strided_slice %16 {offsets = [4, 0, 0], sizes = [1, 4, 128], strides = [1, 1, 1]} : vector<8x4x128xf32> to vector<1x4x128xf32>
    %95 = vector.shape_cast %94 : vector<1x4x128xf32> to vector<4x128xf32>
    %96 = arith.addf %93, %95 : vector<4x128xf32>
    %cst_21 = arith.constant dense<0.000000e+00> : vector<4x128xf32>
    %97 = tpu.matmul %89, %17, %cst_21 {dimension_numbers = #tpu.dot_dimension_numbers<[1], [0], [0], [1], [0, 0, 1, 1], [], []>} : vector<4x32xf32>, vector<32x128xf32>, vector<4x128xf32> -> vector<4x128xf32>
    %98 = arith.addf %96, %97 : vector<4x128xf32>
    %99 = arith.negf %98 : vector<4x128xf32>
    %100 = math.exp %99 : vector<4x128xf32>
    %cst_22 = arith.constant 1.000000e+00 : f32
    %101 = vector.broadcast %cst_22 : f32 to vector<4x128xf32>
    %102 = arith.addf %101, %100 : vector<4x128xf32>
    %103 = arith.divf %101, %102 : vector<4x128xf32>
    %104 = math.tanh %98 : vector<4x128xf32>
    %105 = vector.extract_strided_slice %103 {offsets = [0, 0], sizes = [4, 32], strides = [1, 1]} : vector<4x128xf32> to vector<4x32xf32>
    %106 = vector.extract_strided_slice %103 {offsets = [0, 32], sizes = [4, 32], strides = [1, 1]} : vector<4x128xf32> to vector<4x32xf32>
    %107 = vector.extract_strided_slice %104 {offsets = [0, 64], sizes = [4, 32], strides = [1, 1]} : vector<4x128xf32> to vector<4x32xf32>
    %108 = vector.extract_strided_slice %103 {offsets = [0, 96], sizes = [4, 32], strides = [1, 1]} : vector<4x128xf32> to vector<4x32xf32>
    %109 = arith.mulf %106, %87 : vector<4x32xf32>
    %110 = arith.mulf %105, %107 : vector<4x32xf32>
    %111 = arith.addf %109, %110 : vector<4x32xf32>
    %112 = math.tanh %111 : vector<4x32xf32>
    %113 = arith.mulf %108, %112 : vector<4x32xf32>
    %114 = vector.extract_strided_slice %113 {offsets = [0, 0], sizes = [4, 16], strides = [1, 1]} : vector<4x32xf32> to vector<4x16xf32>
    %115 = vector.extract_strided_slice %113 {offsets = [0, 16], sizes = [4, 16], strides = [1, 1]} : vector<4x32xf32> to vector<4x16xf32>
    %116 = vector.extract_strided_slice %13 {offsets = [4, 0, 0], sizes = [1, 4, 128], strides = [1, 1, 1]} : vector<8x4x128xf32> to vector<1x4x128xf32>
    %117 = vector.shape_cast %116 : vector<1x4x128xf32> to vector<4x128xf32>
    %118 = vector.extract_strided_slice %16 {offsets = [3, 0, 0], sizes = [1, 4, 128], strides = [1, 1, 1]} : vector<8x4x128xf32> to vector<1x4x128xf32>
    %119 = vector.shape_cast %118 : vector<1x4x128xf32> to vector<4x128xf32>
    %120 = arith.addf %117, %119 : vector<4x128xf32>
    %cst_23 = arith.constant dense<0.000000e+00> : vector<4x128xf32>
    %121 = tpu.matmul %113, %17, %cst_23 {dimension_numbers = #tpu.dot_dimension_numbers<[1], [0], [0], [1], [0, 0, 1, 1], [], []>} : vector<4x32xf32>, vector<32x128xf32>, vector<4x128xf32> -> vector<4x128xf32>
    %122 = arith.addf %120, %121 : vector<4x128xf32>
    %123 = arith.negf %122 : vector<4x128xf32>
    %124 = math.exp %123 : vector<4x128xf32>
    %cst_24 = arith.constant 1.000000e+00 : f32
    %125 = vector.broadcast %cst_24 : f32 to vector<4x128xf32>
    %126 = arith.addf %125, %124 : vector<4x128xf32>
    %127 = arith.divf %125, %126 : vector<4x128xf32>
    %128 = math.tanh %122 : vector<4x128xf32>
    %129 = vector.extract_strided_slice %127 {offsets = [0, 0], sizes = [4, 32], strides = [1, 1]} : vector<4x128xf32> to vector<4x32xf32>
    %130 = vector.extract_strided_slice %127 {offsets = [0, 32], sizes = [4, 32], strides = [1, 1]} : vector<4x128xf32> to vector<4x32xf32>
    %131 = vector.extract_strided_slice %128 {offsets = [0, 64], sizes = [4, 32], strides = [1, 1]} : vector<4x128xf32> to vector<4x32xf32>
    %132 = vector.extract_strided_slice %127 {offsets = [0, 96], sizes = [4, 32], strides = [1, 1]} : vector<4x128xf32> to vector<4x32xf32>
    %133 = arith.mulf %130, %111 : vector<4x32xf32>
    %134 = arith.mulf %129, %131 : vector<4x32xf32>
    %135 = arith.addf %133, %134 : vector<4x32xf32>
    %136 = math.tanh %135 : vector<4x32xf32>
    %137 = arith.mulf %132, %136 : vector<4x32xf32>
    %138 = vector.extract_strided_slice %137 {offsets = [0, 0], sizes = [4, 16], strides = [1, 1]} : vector<4x32xf32> to vector<4x16xf32>
    %139 = vector.extract_strided_slice %137 {offsets = [0, 16], sizes = [4, 16], strides = [1, 1]} : vector<4x32xf32> to vector<4x16xf32>
    %140 = vector.extract_strided_slice %13 {offsets = [5, 0, 0], sizes = [1, 4, 128], strides = [1, 1, 1]} : vector<8x4x128xf32> to vector<1x4x128xf32>
    %141 = vector.shape_cast %140 : vector<1x4x128xf32> to vector<4x128xf32>
    %142 = vector.extract_strided_slice %16 {offsets = [2, 0, 0], sizes = [1, 4, 128], strides = [1, 1, 1]} : vector<8x4x128xf32> to vector<1x4x128xf32>
    %143 = vector.shape_cast %142 : vector<1x4x128xf32> to vector<4x128xf32>
    %144 = arith.addf %141, %143 : vector<4x128xf32>
    %cst_25 = arith.constant dense<0.000000e+00> : vector<4x128xf32>
    %145 = tpu.matmul %137, %17, %cst_25 {dimension_numbers = #tpu.dot_dimension_numbers<[1], [0], [0], [1], [0, 0, 1, 1], [], []>} : vector<4x32xf32>, vector<32x128xf32>, vector<4x128xf32> -> vector<4x128xf32>
    %146 = arith.addf %144, %145 : vector<4x128xf32>
    %147 = arith.negf %146 : vector<4x128xf32>
    %148 = math.exp %147 : vector<4x128xf32>
    %cst_26 = arith.constant 1.000000e+00 : f32
    %149 = vector.broadcast %cst_26 : f32 to vector<4x128xf32>
    %150 = arith.addf %149, %148 : vector<4x128xf32>
    %151 = arith.divf %149, %150 : vector<4x128xf32>
    %152 = math.tanh %146 : vector<4x128xf32>
    %153 = vector.extract_strided_slice %151 {offsets = [0, 0], sizes = [4, 32], strides = [1, 1]} : vector<4x128xf32> to vector<4x32xf32>
    %154 = vector.extract_strided_slice %151 {offsets = [0, 32], sizes = [4, 32], strides = [1, 1]} : vector<4x128xf32> to vector<4x32xf32>
    %155 = vector.extract_strided_slice %152 {offsets = [0, 64], sizes = [4, 32], strides = [1, 1]} : vector<4x128xf32> to vector<4x32xf32>
    %156 = vector.extract_strided_slice %151 {offsets = [0, 96], sizes = [4, 32], strides = [1, 1]} : vector<4x128xf32> to vector<4x32xf32>
    %157 = arith.mulf %154, %135 : vector<4x32xf32>
    %158 = arith.mulf %153, %155 : vector<4x32xf32>
    %159 = arith.addf %157, %158 : vector<4x32xf32>
    %160 = math.tanh %159 : vector<4x32xf32>
    %161 = arith.mulf %156, %160 : vector<4x32xf32>
    %162 = vector.extract_strided_slice %161 {offsets = [0, 0], sizes = [4, 16], strides = [1, 1]} : vector<4x32xf32> to vector<4x16xf32>
    %163 = vector.extract_strided_slice %161 {offsets = [0, 16], sizes = [4, 16], strides = [1, 1]} : vector<4x32xf32> to vector<4x16xf32>
    %164 = vector.extract_strided_slice %13 {offsets = [6, 0, 0], sizes = [1, 4, 128], strides = [1, 1, 1]} : vector<8x4x128xf32> to vector<1x4x128xf32>
    %165 = vector.shape_cast %164 : vector<1x4x128xf32> to vector<4x128xf32>
    %166 = vector.extract_strided_slice %16 {offsets = [1, 0, 0], sizes = [1, 4, 128], strides = [1, 1, 1]} : vector<8x4x128xf32> to vector<1x4x128xf32>
    %167 = vector.shape_cast %166 : vector<1x4x128xf32> to vector<4x128xf32>
    %168 = arith.addf %165, %167 : vector<4x128xf32>
    %cst_27 = arith.constant dense<0.000000e+00> : vector<4x128xf32>
    %169 = tpu.matmul %161, %17, %cst_27 {dimension_numbers = #tpu.dot_dimension_numbers<[1], [0], [0], [1], [0, 0, 1, 1], [], []>} : vector<4x32xf32>, vector<32x128xf32>, vector<4x128xf32> -> vector<4x128xf32>
    %170 = arith.addf %168, %169 : vector<4x128xf32>
    %171 = arith.negf %170 : vector<4x128xf32>
    %172 = math.exp %171 : vector<4x128xf32>
    %cst_28 = arith.constant 1.000000e+00 : f32
    %173 = vector.broadcast %cst_28 : f32 to vector<4x128xf32>
    %174 = arith.addf %173, %172 : vector<4x128xf32>
    %175 = arith.divf %173, %174 : vector<4x128xf32>
    %176 = math.tanh %170 : vector<4x128xf32>
    %177 = vector.extract_strided_slice %175 {offsets = [0, 0], sizes = [4, 32], strides = [1, 1]} : vector<4x128xf32> to vector<4x32xf32>
    %178 = vector.extract_strided_slice %175 {offsets = [0, 32], sizes = [4, 32], strides = [1, 1]} : vector<4x128xf32> to vector<4x32xf32>
    %179 = vector.extract_strided_slice %176 {offsets = [0, 64], sizes = [4, 32], strides = [1, 1]} : vector<4x128xf32> to vector<4x32xf32>
    %180 = vector.extract_strided_slice %175 {offsets = [0, 96], sizes = [4, 32], strides = [1, 1]} : vector<4x128xf32> to vector<4x32xf32>
    %181 = arith.mulf %178, %159 : vector<4x32xf32>
    %182 = arith.mulf %177, %179 : vector<4x32xf32>
    %183 = arith.addf %181, %182 : vector<4x32xf32>
    %184 = math.tanh %183 : vector<4x32xf32>
    %185 = arith.mulf %180, %184 : vector<4x32xf32>
    %186 = vector.extract_strided_slice %185 {offsets = [0, 0], sizes = [4, 16], strides = [1, 1]} : vector<4x32xf32> to vector<4x16xf32>
    %187 = vector.extract_strided_slice %185 {offsets = [0, 16], sizes = [4, 16], strides = [1, 1]} : vector<4x32xf32> to vector<4x16xf32>
    %188 = vector.extract_strided_slice %13 {offsets = [7, 0, 0], sizes = [1, 4, 128], strides = [1, 1, 1]} : vector<8x4x128xf32> to vector<1x4x128xf32>
    %189 = vector.shape_cast %188 : vector<1x4x128xf32> to vector<4x128xf32>
    %190 = vector.extract_strided_slice %16 {offsets = [0, 0, 0], sizes = [1, 4, 128], strides = [1, 1, 1]} : vector<8x4x128xf32> to vector<1x4x128xf32>
    %191 = vector.shape_cast %190 : vector<1x4x128xf32> to vector<4x128xf32>
    %192 = arith.addf %189, %191 : vector<4x128xf32>
    %cst_29 = arith.constant dense<0.000000e+00> : vector<4x128xf32>
    %193 = tpu.matmul %185, %17, %cst_29 {dimension_numbers = #tpu.dot_dimension_numbers<[1], [0], [0], [1], [0, 0, 1, 1], [], []>} : vector<4x32xf32>, vector<32x128xf32>, vector<4x128xf32> -> vector<4x128xf32>
    %194 = arith.addf %192, %193 : vector<4x128xf32>
    %195 = arith.negf %194 : vector<4x128xf32>
    %196 = math.exp %195 : vector<4x128xf32>
    %cst_30 = arith.constant 1.000000e+00 : f32
    %197 = vector.broadcast %cst_30 : f32 to vector<4x128xf32>
    %198 = arith.addf %197, %196 : vector<4x128xf32>
    %199 = arith.divf %197, %198 : vector<4x128xf32>
    %200 = math.tanh %194 : vector<4x128xf32>
    %201 = vector.extract_strided_slice %199 {offsets = [0, 0], sizes = [4, 32], strides = [1, 1]} : vector<4x128xf32> to vector<4x32xf32>
    %202 = vector.extract_strided_slice %199 {offsets = [0, 32], sizes = [4, 32], strides = [1, 1]} : vector<4x128xf32> to vector<4x32xf32>
    %203 = vector.extract_strided_slice %200 {offsets = [0, 64], sizes = [4, 32], strides = [1, 1]} : vector<4x128xf32> to vector<4x32xf32>
    %204 = vector.extract_strided_slice %199 {offsets = [0, 96], sizes = [4, 32], strides = [1, 1]} : vector<4x128xf32> to vector<4x32xf32>
    %205 = arith.mulf %202, %183 : vector<4x32xf32>
    %206 = arith.mulf %201, %203 : vector<4x32xf32>
    %207 = arith.addf %205, %206 : vector<4x32xf32>
    %208 = math.tanh %207 : vector<4x32xf32>
    %209 = arith.mulf %204, %208 : vector<4x32xf32>
    %210 = vector.extract_strided_slice %209 {offsets = [0, 0], sizes = [4, 16], strides = [1, 1]} : vector<4x32xf32> to vector<4x16xf32>
    %211 = vector.extract_strided_slice %209 {offsets = [0, 16], sizes = [4, 16], strides = [1, 1]} : vector<4x32xf32> to vector<4x16xf32>
    %212 = vector.shape_cast %42 : vector<4x16xf32> to vector<1x4x16xf32>
    %213 = vector.shape_cast %66 : vector<4x16xf32> to vector<1x4x16xf32>
    %214 = vector.shape_cast %90 : vector<4x16xf32> to vector<1x4x16xf32>
    %215 = vector.shape_cast %114 : vector<4x16xf32> to vector<1x4x16xf32>
    %216 = vector.shape_cast %138 : vector<4x16xf32> to vector<1x4x16xf32>
    %217 = vector.shape_cast %162 : vector<4x16xf32> to vector<1x4x16xf32>
    %218 = vector.shape_cast %186 : vector<4x16xf32> to vector<1x4x16xf32>
    %219 = vector.shape_cast %210 : vector<4x16xf32> to vector<1x4x16xf32>
    %220 = tpu.concatenate %212, %213, %214, %215, %216, %217, %218, %219 in 0 : vector<1x4x16xf32>, vector<1x4x16xf32>, vector<1x4x16xf32>, vector<1x4x16xf32>, vector<1x4x16xf32>, vector<1x4x16xf32>, vector<1x4x16xf32>, vector<1x4x16xf32> -> vector<8x4x16xf32>
    %221 = vector.shape_cast %211 : vector<4x16xf32> to vector<1x4x16xf32>
    %222 = vector.shape_cast %187 : vector<4x16xf32> to vector<1x4x16xf32>
    %223 = vector.shape_cast %163 : vector<4x16xf32> to vector<1x4x16xf32>
    %224 = vector.shape_cast %139 : vector<4x16xf32> to vector<1x4x16xf32>
    %225 = vector.shape_cast %115 : vector<4x16xf32> to vector<1x4x16xf32>
    %226 = vector.shape_cast %91 : vector<4x16xf32> to vector<1x4x16xf32>
    %227 = vector.shape_cast %67 : vector<4x16xf32> to vector<1x4x16xf32>
    %228 = vector.shape_cast %43 : vector<4x16xf32> to vector<1x4x16xf32>
    %229 = tpu.concatenate %221, %222, %223, %224, %225, %226, %227, %228 in 0 : vector<1x4x16xf32>, vector<1x4x16xf32>, vector<1x4x16xf32>, vector<1x4x16xf32>, vector<1x4x16xf32>, vector<1x4x16xf32>, vector<1x4x16xf32>, vector<1x4x16xf32> -> vector<8x4x16xf32>
    %230 = tpu.concatenate %220, %229 in 2 : vector<8x4x16xf32>, vector<8x4x16xf32> -> vector<8x4x32xf32>
    %231 = vector.shape_cast %230 : vector<8x4x32xf32> to vector<32x32xf32>
    %c0_31 = arith.constant 0 : index
    %c0_32 = arith.constant 0 : index
    %232 = vector.load %arg7[%c0_31, %c0_32] : memref<32x128xf32, #tpu.memory_space<vmem>>, vector<32x128xf32>
    %cst_33 = arith.constant dense<0.000000e+00> : vector<32x128xf32>
    %233 = tpu.matmul %231, %232, %cst_33 {dimension_numbers = #tpu.dot_dimension_numbers<[1], [0], [0], [1], [0, 0, 1, 1], [], []>} : vector<32x32xf32>, vector<32x128xf32>, vector<32x128xf32> -> vector<32x128xf32>
    %c0_34 = arith.constant 0 : index
    %c0_35 = arith.constant 0 : index
    %234 = vector.load %arg10[%c0_34, %c0_35] : memref<1x128xf32, #tpu.memory_space<vmem>>, vector<1x128xf32>
    %235 = vector.broadcast %234 : vector<1x128xf32> to vector<32x128xf32>
    %236 = arith.addf %233, %235 : vector<32x128xf32>
    %237 = vector.shape_cast %236 : vector<32x128xf32> to vector<8x4x128xf32>
    %c0_36 = arith.constant 0 : index
    %c0_37 = arith.constant 0 : index
    %238 = vector.load %arg8[%c0_36, %c0_37] : memref<32x128xf32, #tpu.memory_space<vmem>>, vector<32x128xf32>
    %cst_38 = arith.constant dense<0.000000e+00> : vector<32x128xf32>
    %239 = tpu.matmul %231, %238, %cst_38 {dimension_numbers = #tpu.dot_dimension_numbers<[1], [0], [0], [1], [0, 0, 1, 1], [], []>} : vector<32x32xf32>, vector<32x128xf32>, vector<32x128xf32> -> vector<32x128xf32>
    %240 = vector.shape_cast %239 : vector<32x128xf32> to vector<8x4x128xf32>
    %c0_39 = arith.constant 0 : index
    %c0_40 = arith.constant 0 : index
    %241 = vector.load %arg9[%c0_39, %c0_40] : memref<32x128xf32, #tpu.memory_space<vmem>>, vector<32x128xf32>
    %cst_41 = arith.constant 0.000000e+00 : f32
    %242 = vector.broadcast %cst_41 : f32 to vector<4x32xf32>
    %cst_42 = arith.constant 0.000000e+00 : f32
    %243 = vector.broadcast %cst_42 : f32 to vector<4x32xf32>
    %244 = vector.extract_strided_slice %237 {offsets = [0, 0, 0], sizes = [1, 4, 128], strides = [1, 1, 1]} : vector<8x4x128xf32> to vector<1x4x128xf32>
    %245 = vector.shape_cast %244 : vector<1x4x128xf32> to vector<4x128xf32>
    %246 = vector.extract_strided_slice %240 {offsets = [7, 0, 0], sizes = [1, 4, 128], strides = [1, 1, 1]} : vector<8x4x128xf32> to vector<1x4x128xf32>
    %247 = vector.shape_cast %246 : vector<1x4x128xf32> to vector<4x128xf32>
    %248 = arith.addf %245, %247 : vector<4x128xf32>
    %cst_43 = arith.constant dense<0.000000e+00> : vector<4x128xf32>
    %249 = tpu.matmul %242, %241, %cst_43 {dimension_numbers = #tpu.dot_dimension_numbers<[1], [0], [0], [1], [0, 0, 1, 1], [], []>} : vector<4x32xf32>, vector<32x128xf32>, vector<4x128xf32> -> vector<4x128xf32>
    %250 = arith.addf %248, %249 : vector<4x128xf32>
    %251 = arith.negf %250 : vector<4x128xf32>
    %252 = math.exp %251 : vector<4x128xf32>
    %cst_44 = arith.constant 1.000000e+00 : f32
    %253 = vector.broadcast %cst_44 : f32 to vector<4x128xf32>
    %254 = arith.addf %253, %252 : vector<4x128xf32>
    %255 = arith.divf %253, %254 : vector<4x128xf32>
    %256 = math.tanh %250 : vector<4x128xf32>
    %257 = vector.extract_strided_slice %255 {offsets = [0, 0], sizes = [4, 32], strides = [1, 1]} : vector<4x128xf32> to vector<4x32xf32>
    %258 = vector.extract_strided_slice %255 {offsets = [0, 32], sizes = [4, 32], strides = [1, 1]} : vector<4x128xf32> to vector<4x32xf32>
    %259 = vector.extract_strided_slice %256 {offsets = [0, 64], sizes = [4, 32], strides = [1, 1]} : vector<4x128xf32> to vector<4x32xf32>
    %260 = vector.extract_strided_slice %255 {offsets = [0, 96], sizes = [4, 32], strides = [1, 1]} : vector<4x128xf32> to vector<4x32xf32>
    %261 = arith.mulf %258, %243 : vector<4x32xf32>
    %262 = arith.mulf %257, %259 : vector<4x32xf32>
    %263 = arith.addf %261, %262 : vector<4x32xf32>
    %264 = math.tanh %263 : vector<4x32xf32>
    %265 = arith.mulf %260, %264 : vector<4x32xf32>
    %266 = vector.extract_strided_slice %265 {offsets = [0, 0], sizes = [4, 16], strides = [1, 1]} : vector<4x32xf32> to vector<4x16xf32>
    %267 = vector.extract_strided_slice %265 {offsets = [0, 16], sizes = [4, 16], strides = [1, 1]} : vector<4x32xf32> to vector<4x16xf32>
    %268 = vector.extract_strided_slice %237 {offsets = [1, 0, 0], sizes = [1, 4, 128], strides = [1, 1, 1]} : vector<8x4x128xf32> to vector<1x4x128xf32>
    %269 = vector.shape_cast %268 : vector<1x4x128xf32> to vector<4x128xf32>
    %270 = vector.extract_strided_slice %240 {offsets = [6, 0, 0], sizes = [1, 4, 128], strides = [1, 1, 1]} : vector<8x4x128xf32> to vector<1x4x128xf32>
    %271 = vector.shape_cast %270 : vector<1x4x128xf32> to vector<4x128xf32>
    %272 = arith.addf %269, %271 : vector<4x128xf32>
    %cst_45 = arith.constant dense<0.000000e+00> : vector<4x128xf32>
    %273 = tpu.matmul %265, %241, %cst_45 {dimension_numbers = #tpu.dot_dimension_numbers<[1], [0], [0], [1], [0, 0, 1, 1], [], []>} : vector<4x32xf32>, vector<32x128xf32>, vector<4x128xf32> -> vector<4x128xf32>
    %274 = arith.addf %272, %273 : vector<4x128xf32>
    %275 = arith.negf %274 : vector<4x128xf32>
    %276 = math.exp %275 : vector<4x128xf32>
    %cst_46 = arith.constant 1.000000e+00 : f32
    %277 = vector.broadcast %cst_46 : f32 to vector<4x128xf32>
    %278 = arith.addf %277, %276 : vector<4x128xf32>
    %279 = arith.divf %277, %278 : vector<4x128xf32>
    %280 = math.tanh %274 : vector<4x128xf32>
    %281 = vector.extract_strided_slice %279 {offsets = [0, 0], sizes = [4, 32], strides = [1, 1]} : vector<4x128xf32> to vector<4x32xf32>
    %282 = vector.extract_strided_slice %279 {offsets = [0, 32], sizes = [4, 32], strides = [1, 1]} : vector<4x128xf32> to vector<4x32xf32>
    %283 = vector.extract_strided_slice %280 {offsets = [0, 64], sizes = [4, 32], strides = [1, 1]} : vector<4x128xf32> to vector<4x32xf32>
    %284 = vector.extract_strided_slice %279 {offsets = [0, 96], sizes = [4, 32], strides = [1, 1]} : vector<4x128xf32> to vector<4x32xf32>
    %285 = arith.mulf %282, %263 : vector<4x32xf32>
    %286 = arith.mulf %281, %283 : vector<4x32xf32>
    %287 = arith.addf %285, %286 : vector<4x32xf32>
    %288 = math.tanh %287 : vector<4x32xf32>
    %289 = arith.mulf %284, %288 : vector<4x32xf32>
    %290 = vector.extract_strided_slice %289 {offsets = [0, 0], sizes = [4, 16], strides = [1, 1]} : vector<4x32xf32> to vector<4x16xf32>
    %291 = vector.extract_strided_slice %289 {offsets = [0, 16], sizes = [4, 16], strides = [1, 1]} : vector<4x32xf32> to vector<4x16xf32>
    %292 = vector.extract_strided_slice %237 {offsets = [2, 0, 0], sizes = [1, 4, 128], strides = [1, 1, 1]} : vector<8x4x128xf32> to vector<1x4x128xf32>
    %293 = vector.shape_cast %292 : vector<1x4x128xf32> to vector<4x128xf32>
    %294 = vector.extract_strided_slice %240 {offsets = [5, 0, 0], sizes = [1, 4, 128], strides = [1, 1, 1]} : vector<8x4x128xf32> to vector<1x4x128xf32>
    %295 = vector.shape_cast %294 : vector<1x4x128xf32> to vector<4x128xf32>
    %296 = arith.addf %293, %295 : vector<4x128xf32>
    %cst_47 = arith.constant dense<0.000000e+00> : vector<4x128xf32>
    %297 = tpu.matmul %289, %241, %cst_47 {dimension_numbers = #tpu.dot_dimension_numbers<[1], [0], [0], [1], [0, 0, 1, 1], [], []>} : vector<4x32xf32>, vector<32x128xf32>, vector<4x128xf32> -> vector<4x128xf32>
    %298 = arith.addf %296, %297 : vector<4x128xf32>
    %299 = arith.negf %298 : vector<4x128xf32>
    %300 = math.exp %299 : vector<4x128xf32>
    %cst_48 = arith.constant 1.000000e+00 : f32
    %301 = vector.broadcast %cst_48 : f32 to vector<4x128xf32>
    %302 = arith.addf %301, %300 : vector<4x128xf32>
    %303 = arith.divf %301, %302 : vector<4x128xf32>
    %304 = math.tanh %298 : vector<4x128xf32>
    %305 = vector.extract_strided_slice %303 {offsets = [0, 0], sizes = [4, 32], strides = [1, 1]} : vector<4x128xf32> to vector<4x32xf32>
    %306 = vector.extract_strided_slice %303 {offsets = [0, 32], sizes = [4, 32], strides = [1, 1]} : vector<4x128xf32> to vector<4x32xf32>
    %307 = vector.extract_strided_slice %304 {offsets = [0, 64], sizes = [4, 32], strides = [1, 1]} : vector<4x128xf32> to vector<4x32xf32>
    %308 = vector.extract_strided_slice %303 {offsets = [0, 96], sizes = [4, 32], strides = [1, 1]} : vector<4x128xf32> to vector<4x32xf32>
    %309 = arith.mulf %306, %287 : vector<4x32xf32>
    %310 = arith.mulf %305, %307 : vector<4x32xf32>
    %311 = arith.addf %309, %310 : vector<4x32xf32>
    %312 = math.tanh %311 : vector<4x32xf32>
    %313 = arith.mulf %308, %312 : vector<4x32xf32>
    %314 = vector.extract_strided_slice %313 {offsets = [0, 0], sizes = [4, 16], strides = [1, 1]} : vector<4x32xf32> to vector<4x16xf32>
    %315 = vector.extract_strided_slice %313 {offsets = [0, 16], sizes = [4, 16], strides = [1, 1]} : vector<4x32xf32> to vector<4x16xf32>
    %316 = vector.extract_strided_slice %237 {offsets = [3, 0, 0], sizes = [1, 4, 128], strides = [1, 1, 1]} : vector<8x4x128xf32> to vector<1x4x128xf32>
    %317 = vector.shape_cast %316 : vector<1x4x128xf32> to vector<4x128xf32>
    %318 = vector.extract_strided_slice %240 {offsets = [4, 0, 0], sizes = [1, 4, 128], strides = [1, 1, 1]} : vector<8x4x128xf32> to vector<1x4x128xf32>
    %319 = vector.shape_cast %318 : vector<1x4x128xf32> to vector<4x128xf32>
    %320 = arith.addf %317, %319 : vector<4x128xf32>
    %cst_49 = arith.constant dense<0.000000e+00> : vector<4x128xf32>
    %321 = tpu.matmul %313, %241, %cst_49 {dimension_numbers = #tpu.dot_dimension_numbers<[1], [0], [0], [1], [0, 0, 1, 1], [], []>} : vector<4x32xf32>, vector<32x128xf32>, vector<4x128xf32> -> vector<4x128xf32>
    %322 = arith.addf %320, %321 : vector<4x128xf32>
    %323 = arith.negf %322 : vector<4x128xf32>
    %324 = math.exp %323 : vector<4x128xf32>
    %cst_50 = arith.constant 1.000000e+00 : f32
    %325 = vector.broadcast %cst_50 : f32 to vector<4x128xf32>
    %326 = arith.addf %325, %324 : vector<4x128xf32>
    %327 = arith.divf %325, %326 : vector<4x128xf32>
    %328 = math.tanh %322 : vector<4x128xf32>
    %329 = vector.extract_strided_slice %327 {offsets = [0, 0], sizes = [4, 32], strides = [1, 1]} : vector<4x128xf32> to vector<4x32xf32>
    %330 = vector.extract_strided_slice %327 {offsets = [0, 32], sizes = [4, 32], strides = [1, 1]} : vector<4x128xf32> to vector<4x32xf32>
    %331 = vector.extract_strided_slice %328 {offsets = [0, 64], sizes = [4, 32], strides = [1, 1]} : vector<4x128xf32> to vector<4x32xf32>
    %332 = vector.extract_strided_slice %327 {offsets = [0, 96], sizes = [4, 32], strides = [1, 1]} : vector<4x128xf32> to vector<4x32xf32>
    %333 = arith.mulf %330, %311 : vector<4x32xf32>
    %334 = arith.mulf %329, %331 : vector<4x32xf32>
    %335 = arith.addf %333, %334 : vector<4x32xf32>
    %336 = math.tanh %335 : vector<4x32xf32>
    %337 = arith.mulf %332, %336 : vector<4x32xf32>
    %338 = vector.extract_strided_slice %337 {offsets = [0, 0], sizes = [4, 16], strides = [1, 1]} : vector<4x32xf32> to vector<4x16xf32>
    %339 = vector.extract_strided_slice %337 {offsets = [0, 16], sizes = [4, 16], strides = [1, 1]} : vector<4x32xf32> to vector<4x16xf32>
    %340 = vector.extract_strided_slice %237 {offsets = [4, 0, 0], sizes = [1, 4, 128], strides = [1, 1, 1]} : vector<8x4x128xf32> to vector<1x4x128xf32>
    %341 = vector.shape_cast %340 : vector<1x4x128xf32> to vector<4x128xf32>
    %342 = vector.extract_strided_slice %240 {offsets = [3, 0, 0], sizes = [1, 4, 128], strides = [1, 1, 1]} : vector<8x4x128xf32> to vector<1x4x128xf32>
    %343 = vector.shape_cast %342 : vector<1x4x128xf32> to vector<4x128xf32>
    %344 = arith.addf %341, %343 : vector<4x128xf32>
    %cst_51 = arith.constant dense<0.000000e+00> : vector<4x128xf32>
    %345 = tpu.matmul %337, %241, %cst_51 {dimension_numbers = #tpu.dot_dimension_numbers<[1], [0], [0], [1], [0, 0, 1, 1], [], []>} : vector<4x32xf32>, vector<32x128xf32>, vector<4x128xf32> -> vector<4x128xf32>
    %346 = arith.addf %344, %345 : vector<4x128xf32>
    %347 = arith.negf %346 : vector<4x128xf32>
    %348 = math.exp %347 : vector<4x128xf32>
    %cst_52 = arith.constant 1.000000e+00 : f32
    %349 = vector.broadcast %cst_52 : f32 to vector<4x128xf32>
    %350 = arith.addf %349, %348 : vector<4x128xf32>
    %351 = arith.divf %349, %350 : vector<4x128xf32>
    %352 = math.tanh %346 : vector<4x128xf32>
    %353 = vector.extract_strided_slice %351 {offsets = [0, 0], sizes = [4, 32], strides = [1, 1]} : vector<4x128xf32> to vector<4x32xf32>
    %354 = vector.extract_strided_slice %351 {offsets = [0, 32], sizes = [4, 32], strides = [1, 1]} : vector<4x128xf32> to vector<4x32xf32>
    %355 = vector.extract_strided_slice %352 {offsets = [0, 64], sizes = [4, 32], strides = [1, 1]} : vector<4x128xf32> to vector<4x32xf32>
    %356 = vector.extract_strided_slice %351 {offsets = [0, 96], sizes = [4, 32], strides = [1, 1]} : vector<4x128xf32> to vector<4x32xf32>
    %357 = arith.mulf %354, %335 : vector<4x32xf32>
    %358 = arith.mulf %353, %355 : vector<4x32xf32>
    %359 = arith.addf %357, %358 : vector<4x32xf32>
    %360 = math.tanh %359 : vector<4x32xf32>
    %361 = arith.mulf %356, %360 : vector<4x32xf32>
    %362 = vector.extract_strided_slice %361 {offsets = [0, 0], sizes = [4, 16], strides = [1, 1]} : vector<4x32xf32> to vector<4x16xf32>
    %363 = vector.extract_strided_slice %361 {offsets = [0, 16], sizes = [4, 16], strides = [1, 1]} : vector<4x32xf32> to vector<4x16xf32>
    %364 = vector.extract_strided_slice %237 {offsets = [5, 0, 0], sizes = [1, 4, 128], strides = [1, 1, 1]} : vector<8x4x128xf32> to vector<1x4x128xf32>
    %365 = vector.shape_cast %364 : vector<1x4x128xf32> to vector<4x128xf32>
    %366 = vector.extract_strided_slice %240 {offsets = [2, 0, 0], sizes = [1, 4, 128], strides = [1, 1, 1]} : vector<8x4x128xf32> to vector<1x4x128xf32>
    %367 = vector.shape_cast %366 : vector<1x4x128xf32> to vector<4x128xf32>
    %368 = arith.addf %365, %367 : vector<4x128xf32>
    %cst_53 = arith.constant dense<0.000000e+00> : vector<4x128xf32>
    %369 = tpu.matmul %361, %241, %cst_53 {dimension_numbers = #tpu.dot_dimension_numbers<[1], [0], [0], [1], [0, 0, 1, 1], [], []>} : vector<4x32xf32>, vector<32x128xf32>, vector<4x128xf32> -> vector<4x128xf32>
    %370 = arith.addf %368, %369 : vector<4x128xf32>
    %371 = arith.negf %370 : vector<4x128xf32>
    %372 = math.exp %371 : vector<4x128xf32>
    %cst_54 = arith.constant 1.000000e+00 : f32
    %373 = vector.broadcast %cst_54 : f32 to vector<4x128xf32>
    %374 = arith.addf %373, %372 : vector<4x128xf32>
    %375 = arith.divf %373, %374 : vector<4x128xf32>
    %376 = math.tanh %370 : vector<4x128xf32>
    %377 = vector.extract_strided_slice %375 {offsets = [0, 0], sizes = [4, 32], strides = [1, 1]} : vector<4x128xf32> to vector<4x32xf32>
    %378 = vector.extract_strided_slice %375 {offsets = [0, 32], sizes = [4, 32], strides = [1, 1]} : vector<4x128xf32> to vector<4x32xf32>
    %379 = vector.extract_strided_slice %376 {offsets = [0, 64], sizes = [4, 32], strides = [1, 1]} : vector<4x128xf32> to vector<4x32xf32>
    %380 = vector.extract_strided_slice %375 {offsets = [0, 96], sizes = [4, 32], strides = [1, 1]} : vector<4x128xf32> to vector<4x32xf32>
    %381 = arith.mulf %378, %359 : vector<4x32xf32>
    %382 = arith.mulf %377, %379 : vector<4x32xf32>
    %383 = arith.addf %381, %382 : vector<4x32xf32>
    %384 = math.tanh %383 : vector<4x32xf32>
    %385 = arith.mulf %380, %384 : vector<4x32xf32>
    %386 = vector.extract_strided_slice %385 {offsets = [0, 0], sizes = [4, 16], strides = [1, 1]} : vector<4x32xf32> to vector<4x16xf32>
    %387 = vector.extract_strided_slice %385 {offsets = [0, 16], sizes = [4, 16], strides = [1, 1]} : vector<4x32xf32> to vector<4x16xf32>
    %388 = vector.extract_strided_slice %237 {offsets = [6, 0, 0], sizes = [1, 4, 128], strides = [1, 1, 1]} : vector<8x4x128xf32> to vector<1x4x128xf32>
    %389 = vector.shape_cast %388 : vector<1x4x128xf32> to vector<4x128xf32>
    %390 = vector.extract_strided_slice %240 {offsets = [1, 0, 0], sizes = [1, 4, 128], strides = [1, 1, 1]} : vector<8x4x128xf32> to vector<1x4x128xf32>
    %391 = vector.shape_cast %390 : vector<1x4x128xf32> to vector<4x128xf32>
    %392 = arith.addf %389, %391 : vector<4x128xf32>
    %cst_55 = arith.constant dense<0.000000e+00> : vector<4x128xf32>
    %393 = tpu.matmul %385, %241, %cst_55 {dimension_numbers = #tpu.dot_dimension_numbers<[1], [0], [0], [1], [0, 0, 1, 1], [], []>} : vector<4x32xf32>, vector<32x128xf32>, vector<4x128xf32> -> vector<4x128xf32>
    %394 = arith.addf %392, %393 : vector<4x128xf32>
    %395 = arith.negf %394 : vector<4x128xf32>
    %396 = math.exp %395 : vector<4x128xf32>
    %cst_56 = arith.constant 1.000000e+00 : f32
    %397 = vector.broadcast %cst_56 : f32 to vector<4x128xf32>
    %398 = arith.addf %397, %396 : vector<4x128xf32>
    %399 = arith.divf %397, %398 : vector<4x128xf32>
    %400 = math.tanh %394 : vector<4x128xf32>
    %401 = vector.extract_strided_slice %399 {offsets = [0, 0], sizes = [4, 32], strides = [1, 1]} : vector<4x128xf32> to vector<4x32xf32>
    %402 = vector.extract_strided_slice %399 {offsets = [0, 32], sizes = [4, 32], strides = [1, 1]} : vector<4x128xf32> to vector<4x32xf32>
    %403 = vector.extract_strided_slice %400 {offsets = [0, 64], sizes = [4, 32], strides = [1, 1]} : vector<4x128xf32> to vector<4x32xf32>
    %404 = vector.extract_strided_slice %399 {offsets = [0, 96], sizes = [4, 32], strides = [1, 1]} : vector<4x128xf32> to vector<4x32xf32>
    %405 = arith.mulf %402, %383 : vector<4x32xf32>
    %406 = arith.mulf %401, %403 : vector<4x32xf32>
    %407 = arith.addf %405, %406 : vector<4x32xf32>
    %408 = math.tanh %407 : vector<4x32xf32>
    %409 = arith.mulf %404, %408 : vector<4x32xf32>
    %410 = vector.extract_strided_slice %409 {offsets = [0, 0], sizes = [4, 16], strides = [1, 1]} : vector<4x32xf32> to vector<4x16xf32>
    %411 = vector.extract_strided_slice %409 {offsets = [0, 16], sizes = [4, 16], strides = [1, 1]} : vector<4x32xf32> to vector<4x16xf32>
    %412 = vector.extract_strided_slice %237 {offsets = [7, 0, 0], sizes = [1, 4, 128], strides = [1, 1, 1]} : vector<8x4x128xf32> to vector<1x4x128xf32>
    %413 = vector.shape_cast %412 : vector<1x4x128xf32> to vector<4x128xf32>
    %414 = vector.extract_strided_slice %240 {offsets = [0, 0, 0], sizes = [1, 4, 128], strides = [1, 1, 1]} : vector<8x4x128xf32> to vector<1x4x128xf32>
    %415 = vector.shape_cast %414 : vector<1x4x128xf32> to vector<4x128xf32>
    %416 = arith.addf %413, %415 : vector<4x128xf32>
    %cst_57 = arith.constant dense<0.000000e+00> : vector<4x128xf32>
    %417 = tpu.matmul %409, %241, %cst_57 {dimension_numbers = #tpu.dot_dimension_numbers<[1], [0], [0], [1], [0, 0, 1, 1], [], []>} : vector<4x32xf32>, vector<32x128xf32>, vector<4x128xf32> -> vector<4x128xf32>
    %418 = arith.addf %416, %417 : vector<4x128xf32>
    %419 = arith.negf %418 : vector<4x128xf32>
    %420 = math.exp %419 : vector<4x128xf32>
    %cst_58 = arith.constant 1.000000e+00 : f32
    %421 = vector.broadcast %cst_58 : f32 to vector<4x128xf32>
    %422 = arith.addf %421, %420 : vector<4x128xf32>
    %423 = arith.divf %421, %422 : vector<4x128xf32>
    %424 = math.tanh %418 : vector<4x128xf32>
    %425 = vector.extract_strided_slice %423 {offsets = [0, 0], sizes = [4, 32], strides = [1, 1]} : vector<4x128xf32> to vector<4x32xf32>
    %426 = vector.extract_strided_slice %423 {offsets = [0, 32], sizes = [4, 32], strides = [1, 1]} : vector<4x128xf32> to vector<4x32xf32>
    %427 = vector.extract_strided_slice %424 {offsets = [0, 64], sizes = [4, 32], strides = [1, 1]} : vector<4x128xf32> to vector<4x32xf32>
    %428 = vector.extract_strided_slice %423 {offsets = [0, 96], sizes = [4, 32], strides = [1, 1]} : vector<4x128xf32> to vector<4x32xf32>
    %429 = arith.mulf %426, %407 : vector<4x32xf32>
    %430 = arith.mulf %425, %427 : vector<4x32xf32>
    %431 = arith.addf %429, %430 : vector<4x32xf32>
    %432 = math.tanh %431 : vector<4x32xf32>
    %433 = arith.mulf %428, %432 : vector<4x32xf32>
    %434 = vector.extract_strided_slice %433 {offsets = [0, 0], sizes = [4, 16], strides = [1, 1]} : vector<4x32xf32> to vector<4x16xf32>
    %435 = vector.extract_strided_slice %433 {offsets = [0, 16], sizes = [4, 16], strides = [1, 1]} : vector<4x32xf32> to vector<4x16xf32>
    %436 = vector.shape_cast %266 : vector<4x16xf32> to vector<1x4x16xf32>
    %437 = vector.shape_cast %290 : vector<4x16xf32> to vector<1x4x16xf32>
    %438 = vector.shape_cast %314 : vector<4x16xf32> to vector<1x4x16xf32>
    %439 = vector.shape_cast %338 : vector<4x16xf32> to vector<1x4x16xf32>
    %440 = vector.shape_cast %362 : vector<4x16xf32> to vector<1x4x16xf32>
    %441 = vector.shape_cast %386 : vector<4x16xf32> to vector<1x4x16xf32>
    %442 = vector.shape_cast %410 : vector<4x16xf32> to vector<1x4x16xf32>
    %443 = vector.shape_cast %434 : vector<4x16xf32> to vector<1x4x16xf32>
    %444 = tpu.concatenate %436, %437, %438, %439, %440, %441, %442, %443 in 0 : vector<1x4x16xf32>, vector<1x4x16xf32>, vector<1x4x16xf32>, vector<1x4x16xf32>, vector<1x4x16xf32>, vector<1x4x16xf32>, vector<1x4x16xf32>, vector<1x4x16xf32> -> vector<8x4x16xf32>
    %445 = vector.shape_cast %435 : vector<4x16xf32> to vector<1x4x16xf32>
    %446 = vector.shape_cast %411 : vector<4x16xf32> to vector<1x4x16xf32>
    %447 = vector.shape_cast %387 : vector<4x16xf32> to vector<1x4x16xf32>
    %448 = vector.shape_cast %363 : vector<4x16xf32> to vector<1x4x16xf32>
    %449 = vector.shape_cast %339 : vector<4x16xf32> to vector<1x4x16xf32>
    %450 = vector.shape_cast %315 : vector<4x16xf32> to vector<1x4x16xf32>
    %451 = vector.shape_cast %291 : vector<4x16xf32> to vector<1x4x16xf32>
    %452 = vector.shape_cast %267 : vector<4x16xf32> to vector<1x4x16xf32>
    %453 = tpu.concatenate %445, %446, %447, %448, %449, %450, %451, %452 in 0 : vector<1x4x16xf32>, vector<1x4x16xf32>, vector<1x4x16xf32>, vector<1x4x16xf32>, vector<1x4x16xf32>, vector<1x4x16xf32>, vector<1x4x16xf32>, vector<1x4x16xf32> -> vector<8x4x16xf32>
    %454 = tpu.concatenate %444, %453 in 2 : vector<8x4x16xf32>, vector<8x4x16xf32> -> vector<8x4x32xf32>
    %c0_59 = arith.constant 0 : index
    %c0_60 = arith.constant 0 : index
    %455 = vector.load %arg11[%c0_59, %c0_60] : memref<32x16xf32, #tpu.memory_space<vmem>>, vector<32x16xf32>
    %c0_61 = arith.constant 0 : index
    %c0_62 = arith.constant 0 : index
    %456 = vector.load %arg12[%c0_61, %c0_62] : memref<4x16xf32, #tpu.memory_space<vmem>>, vector<4x16xf32>
    %c0_63 = arith.constant 0 : index
    %c0_64 = arith.constant 0 : index
    %457 = vector.load %arg1[%c0_63, %c0_64] : memref<4x8xi32, #tpu.memory_space<vmem>>, vector<4x8xi32>
    %458 = vector.extract_strided_slice %454 {offsets = [0, 0, 0], sizes = [8, 1, 32], strides = [1, 1, 1]} : vector<8x4x32xf32> to vector<8x1x32xf32>
    %459 = vector.shape_cast %458 : vector<8x1x32xf32> to vector<8x32xf32>
    %cst_65 = arith.constant dense<0.000000e+00> : vector<8x16xf32>
    %460 = tpu.matmul %459, %455, %cst_65 {dimension_numbers = #tpu.dot_dimension_numbers<[1], [0], [0], [1], [0, 0, 1, 1], [], []>} : vector<8x32xf32>, vector<32x16xf32>, vector<8x16xf32> -> vector<8x16xf32>
    %461 = math.tanh %460 : vector<8x16xf32>
    %cst_66 = arith.constant dense<0.000000e+00> : vector<4x8xf32>
    %462 = tpu.matmul %456, %461, %cst_66 {dimension_numbers = #tpu.dot_dimension_numbers<[1], [1], [0], [0], [0, 0, 1, 0], [], []>} : vector<4x16xf32>, vector<8x16xf32>, vector<4x8xf32> -> vector<4x8xf32>
    %463 = vector.extract_strided_slice %457 {offsets = [0, 0], sizes = [1, 8], strides = [1, 1]} : vector<4x8xi32> to vector<1x8xi32>
    %c0_i32 = arith.constant 0 : i32
    %464 = vector.broadcast %c0_i32 : i32 to vector<1x8xi32>
    %465 = arith.cmpi eq, %463, %464 : vector<1x8xi32>
    %cst_67 = arith.constant -1.000000e+04 : f32
    %cst_68 = arith.constant 0.000000e+00 : f32
    %466 = vector.broadcast %cst_67 : f32 to vector<1x8xf32>
    %467 = vector.broadcast %cst_68 : f32 to vector<1x8xf32>
    %468 = arith.select %465, %466, %467 : vector<1x8xi1>, vector<1x8xf32>
    %469 = vector.broadcast %468 : vector<1x8xf32> to vector<4x8xf32>
    %470 = arith.addf %462, %469 : vector<4x8xf32>
    %cst_69 = arith.constant dense<0xFF800000> : vector<4xf32>
    %471 = vector.multi_reduction <maximumf>, %470, %cst_69 [1] : vector<4x8xf32> to vector<4xf32>
    %472 = vector.shape_cast %471 : vector<4xf32> to vector<4x1xf32>
    %473 = vector.broadcast %472 : vector<4x1xf32> to vector<4x8xf32>
    %474 = arith.subf %470, %473 : vector<4x8xf32>
    %475 = math.exp %474 : vector<4x8xf32>
    %cst_70 = arith.constant dense<0.000000e+00> : vector<4xf32>
    %476 = vector.multi_reduction <add>, %475, %cst_70 [1] : vector<4x8xf32> to vector<4xf32>
    %477 = vector.shape_cast %476 : vector<4xf32> to vector<4x1xf32>
    %478 = tpu.reciprocal %477 {approx = true} : vector<4x1xf32> -> vector<4x1xf32>
    %479 = vector.broadcast %478 : vector<4x1xf32> to vector<4x8xf32>
    %480 = arith.mulf %475, %479 : vector<4x8xf32>
    %cst_71 = arith.constant dense<0.000000e+00> : vector<4x32xf32>
    %481 = tpu.matmul %480, %459, %cst_71 {dimension_numbers = #tpu.dot_dimension_numbers<[1], [0], [0], [1], [0, 0, 1, 1], [], []>} : vector<4x8xf32>, vector<8x32xf32>, vector<4x32xf32> -> vector<4x32xf32>
    %482 = vector.extract_strided_slice %454 {offsets = [0, 1, 0], sizes = [8, 1, 32], strides = [1, 1, 1]} : vector<8x4x32xf32> to vector<8x1x32xf32>
    %483 = vector.shape_cast %482 : vector<8x1x32xf32> to vector<8x32xf32>
    %cst_72 = arith.constant dense<0.000000e+00> : vector<8x16xf32>
    %484 = tpu.matmul %483, %455, %cst_72 {dimension_numbers = #tpu.dot_dimension_numbers<[1], [0], [0], [1], [0, 0, 1, 1], [], []>} : vector<8x32xf32>, vector<32x16xf32>, vector<8x16xf32> -> vector<8x16xf32>
    %485 = math.tanh %484 : vector<8x16xf32>
    %cst_73 = arith.constant dense<0.000000e+00> : vector<4x8xf32>
    %486 = tpu.matmul %456, %485, %cst_73 {dimension_numbers = #tpu.dot_dimension_numbers<[1], [1], [0], [0], [0, 0, 1, 0], [], []>} : vector<4x16xf32>, vector<8x16xf32>, vector<4x8xf32> -> vector<4x8xf32>
    %487 = vector.extract_strided_slice %457 {offsets = [1, 0], sizes = [1, 8], strides = [1, 1]} : vector<4x8xi32> to vector<1x8xi32>
    %c0_i32_74 = arith.constant 0 : i32
    %488 = vector.broadcast %c0_i32_74 : i32 to vector<1x8xi32>
    %489 = arith.cmpi eq, %487, %488 : vector<1x8xi32>
    %cst_75 = arith.constant -1.000000e+04 : f32
    %cst_76 = arith.constant 0.000000e+00 : f32
    %490 = vector.broadcast %cst_75 : f32 to vector<1x8xf32>
    %491 = vector.broadcast %cst_76 : f32 to vector<1x8xf32>
    %492 = arith.select %489, %490, %491 : vector<1x8xi1>, vector<1x8xf32>
    %493 = vector.broadcast %492 : vector<1x8xf32> to vector<4x8xf32>
    %494 = arith.addf %486, %493 : vector<4x8xf32>
    %cst_77 = arith.constant dense<0xFF800000> : vector<4xf32>
    %495 = vector.multi_reduction <maximumf>, %494, %cst_77 [1] : vector<4x8xf32> to vector<4xf32>
    %496 = vector.shape_cast %495 : vector<4xf32> to vector<4x1xf32>
    %497 = vector.broadcast %496 : vector<4x1xf32> to vector<4x8xf32>
    %498 = arith.subf %494, %497 : vector<4x8xf32>
    %499 = math.exp %498 : vector<4x8xf32>
    %cst_78 = arith.constant dense<0.000000e+00> : vector<4xf32>
    %500 = vector.multi_reduction <add>, %499, %cst_78 [1] : vector<4x8xf32> to vector<4xf32>
    %501 = vector.shape_cast %500 : vector<4xf32> to vector<4x1xf32>
    %502 = tpu.reciprocal %501 {approx = true} : vector<4x1xf32> -> vector<4x1xf32>
    %503 = vector.broadcast %502 : vector<4x1xf32> to vector<4x8xf32>
    %504 = arith.mulf %499, %503 : vector<4x8xf32>
    %cst_79 = arith.constant dense<0.000000e+00> : vector<4x32xf32>
    %505 = tpu.matmul %504, %483, %cst_79 {dimension_numbers = #tpu.dot_dimension_numbers<[1], [0], [0], [1], [0, 0, 1, 1], [], []>} : vector<4x8xf32>, vector<8x32xf32>, vector<4x32xf32> -> vector<4x32xf32>
    %506 = vector.extract_strided_slice %454 {offsets = [0, 2, 0], sizes = [8, 1, 32], strides = [1, 1, 1]} : vector<8x4x32xf32> to vector<8x1x32xf32>
    %507 = vector.shape_cast %506 : vector<8x1x32xf32> to vector<8x32xf32>
    %cst_80 = arith.constant dense<0.000000e+00> : vector<8x16xf32>
    %508 = tpu.matmul %507, %455, %cst_80 {dimension_numbers = #tpu.dot_dimension_numbers<[1], [0], [0], [1], [0, 0, 1, 1], [], []>} : vector<8x32xf32>, vector<32x16xf32>, vector<8x16xf32> -> vector<8x16xf32>
    %509 = math.tanh %508 : vector<8x16xf32>
    %cst_81 = arith.constant dense<0.000000e+00> : vector<4x8xf32>
    %510 = tpu.matmul %456, %509, %cst_81 {dimension_numbers = #tpu.dot_dimension_numbers<[1], [1], [0], [0], [0, 0, 1, 0], [], []>} : vector<4x16xf32>, vector<8x16xf32>, vector<4x8xf32> -> vector<4x8xf32>
    %511 = vector.extract_strided_slice %457 {offsets = [2, 0], sizes = [1, 8], strides = [1, 1]} : vector<4x8xi32> to vector<1x8xi32>
    %c0_i32_82 = arith.constant 0 : i32
    %512 = vector.broadcast %c0_i32_82 : i32 to vector<1x8xi32>
    %513 = arith.cmpi eq, %511, %512 : vector<1x8xi32>
    %cst_83 = arith.constant -1.000000e+04 : f32
    %cst_84 = arith.constant 0.000000e+00 : f32
    %514 = vector.broadcast %cst_83 : f32 to vector<1x8xf32>
    %515 = vector.broadcast %cst_84 : f32 to vector<1x8xf32>
    %516 = arith.select %513, %514, %515 : vector<1x8xi1>, vector<1x8xf32>
    %517 = vector.broadcast %516 : vector<1x8xf32> to vector<4x8xf32>
    %518 = arith.addf %510, %517 : vector<4x8xf32>
    %cst_85 = arith.constant dense<0xFF800000> : vector<4xf32>
    %519 = vector.multi_reduction <maximumf>, %518, %cst_85 [1] : vector<4x8xf32> to vector<4xf32>
    %520 = vector.shape_cast %519 : vector<4xf32> to vector<4x1xf32>
    %521 = vector.broadcast %520 : vector<4x1xf32> to vector<4x8xf32>
    %522 = arith.subf %518, %521 : vector<4x8xf32>
    %523 = math.exp %522 : vector<4x8xf32>
    %cst_86 = arith.constant dense<0.000000e+00> : vector<4xf32>
    %524 = vector.multi_reduction <add>, %523, %cst_86 [1] : vector<4x8xf32> to vector<4xf32>
    %525 = vector.shape_cast %524 : vector<4xf32> to vector<4x1xf32>
    %526 = tpu.reciprocal %525 {approx = true} : vector<4x1xf32> -> vector<4x1xf32>
    %527 = vector.broadcast %526 : vector<4x1xf32> to vector<4x8xf32>
    %528 = arith.mulf %523, %527 : vector<4x8xf32>
    %cst_87 = arith.constant dense<0.000000e+00> : vector<4x32xf32>
    %529 = tpu.matmul %528, %507, %cst_87 {dimension_numbers = #tpu.dot_dimension_numbers<[1], [0], [0], [1], [0, 0, 1, 1], [], []>} : vector<4x8xf32>, vector<8x32xf32>, vector<4x32xf32> -> vector<4x32xf32>
    %530 = vector.extract_strided_slice %454 {offsets = [0, 3, 0], sizes = [8, 1, 32], strides = [1, 1, 1]} : vector<8x4x32xf32> to vector<8x1x32xf32>
    %531 = vector.shape_cast %530 : vector<8x1x32xf32> to vector<8x32xf32>
    %cst_88 = arith.constant dense<0.000000e+00> : vector<8x16xf32>
    %532 = tpu.matmul %531, %455, %cst_88 {dimension_numbers = #tpu.dot_dimension_numbers<[1], [0], [0], [1], [0, 0, 1, 1], [], []>} : vector<8x32xf32>, vector<32x16xf32>, vector<8x16xf32> -> vector<8x16xf32>
    %533 = math.tanh %532 : vector<8x16xf32>
    %cst_89 = arith.constant dense<0.000000e+00> : vector<4x8xf32>
    %534 = tpu.matmul %456, %533, %cst_89 {dimension_numbers = #tpu.dot_dimension_numbers<[1], [1], [0], [0], [0, 0, 1, 0], [], []>} : vector<4x16xf32>, vector<8x16xf32>, vector<4x8xf32> -> vector<4x8xf32>
    %535 = vector.extract_strided_slice %457 {offsets = [3, 0], sizes = [1, 8], strides = [1, 1]} : vector<4x8xi32> to vector<1x8xi32>
    %c0_i32_90 = arith.constant 0 : i32
    %536 = vector.broadcast %c0_i32_90 : i32 to vector<1x8xi32>
    %537 = arith.cmpi eq, %535, %536 : vector<1x8xi32>
    %cst_91 = arith.constant -1.000000e+04 : f32
    %cst_92 = arith.constant 0.000000e+00 : f32
    %538 = vector.broadcast %cst_91 : f32 to vector<1x8xf32>
    %539 = vector.broadcast %cst_92 : f32 to vector<1x8xf32>
    %540 = arith.select %537, %538, %539 : vector<1x8xi1>, vector<1x8xf32>
    %541 = vector.broadcast %540 : vector<1x8xf32> to vector<4x8xf32>
    %542 = arith.addf %534, %541 : vector<4x8xf32>
    %cst_93 = arith.constant dense<0xFF800000> : vector<4xf32>
    %543 = vector.multi_reduction <maximumf>, %542, %cst_93 [1] : vector<4x8xf32> to vector<4xf32>
    %544 = vector.shape_cast %543 : vector<4xf32> to vector<4x1xf32>
    %545 = vector.broadcast %544 : vector<4x1xf32> to vector<4x8xf32>
    %546 = arith.subf %542, %545 : vector<4x8xf32>
    %547 = math.exp %546 : vector<4x8xf32>
    %cst_94 = arith.constant dense<0.000000e+00> : vector<4xf32>
    %548 = vector.multi_reduction <add>, %547, %cst_94 [1] : vector<4x8xf32> to vector<4xf32>
    %549 = vector.shape_cast %548 : vector<4xf32> to vector<4x1xf32>
    %550 = tpu.reciprocal %549 {approx = true} : vector<4x1xf32> -> vector<4x1xf32>
    %551 = vector.broadcast %550 : vector<4x1xf32> to vector<4x8xf32>
    %552 = arith.mulf %547, %551 : vector<4x8xf32>
    %cst_95 = arith.constant dense<0.000000e+00> : vector<4x32xf32>
    %553 = tpu.matmul %552, %531, %cst_95 {dimension_numbers = #tpu.dot_dimension_numbers<[1], [0], [0], [1], [0, 0, 1, 1], [], []>} : vector<4x8xf32>, vector<8x32xf32>, vector<4x32xf32> -> vector<4x32xf32>
    %554 = vector.shape_cast %481 : vector<4x32xf32> to vector<1x4x32xf32>
    %555 = vector.shape_cast %505 : vector<4x32xf32> to vector<1x4x32xf32>
    %556 = vector.shape_cast %529 : vector<4x32xf32> to vector<1x4x32xf32>
    %557 = vector.shape_cast %553 : vector<4x32xf32> to vector<1x4x32xf32>
    %558 = tpu.concatenate %554, %555, %556, %557 in 0 : vector<1x4x32xf32>, vector<1x4x32xf32>, vector<1x4x32xf32>, vector<1x4x32xf32> -> vector<4x4x32xf32>
    %c0_96 = arith.constant 0 : index
    %c0_97 = arith.constant 0 : index
    %c0_98 = arith.constant 0 : index
    %559 = vector.load %arg13[%c0_96, %c0_97, %c0_98] : memref<4x4x32xf32, #tpu.memory_space<vmem>>, vector<4x4x32xf32>
    tpu.vector_store %arg13[%c0_96, %c0_97, %c0_98], %558 {strides = array<i32>} : memref<4x4x32xf32, #tpu.memory_space<vmem>>, vector<4x4x32xf32>,
    %560 = vector.shape_cast %480 : vector<4x8xf32> to vector<1x4x8xf32>
    %561 = vector.shape_cast %504 : vector<4x8xf32> to vector<1x4x8xf32>
    %562 = vector.shape_cast %528 : vector<4x8xf32> to vector<1x4x8xf32>
    %563 = vector.shape_cast %552 : vector<4x8xf32> to vector<1x4x8xf32>
    %564 = tpu.concatenate %560, %561, %562, %563 in 0 : vector<1x4x8xf32>, vector<1x4x8xf32>, vector<1x4x8xf32>, vector<1x4x8xf32> -> vector<4x4x8xf32>
    %c0_99 = arith.constant 0 : index
    %c0_100 = arith.constant 0 : index
    %c0_101 = arith.constant 0 : index
    %565 = vector.load %arg14[%c0_99, %c0_100, %c0_101] : memref<4x4x8xf32, #tpu.memory_space<vmem>>, vector<4x4x8xf32>
    tpu.vector_store %arg14[%c0_99, %c0_100, %c0_101], %564 {strides = array<i32>} : memref<4x4x8xf32, #tpu.memory_space<vmem>>, vector<4x4x8xf32>,
    return
  }
}

</mosaic_0001>

<bundles_post_ra>
// kernel: forward_pallas.1
= control target key start
LH: loop header
LB: loop body
LE: loop exit
PB: predicated region body
PF: predicated region fallthrough
CT: control target
= control target key end

     0   :  { %20 = vsyncpa [#allocation3], 0  ;;  %s4998_s0 = inlined_call_operand.vmem [shape: s32[32,1], index: 0, kind: input, shape index: {}]   ;;  %s4999_s1 = inlined_call_operand.vmem [shape: s32[4,8], index: 1, kind: input, shape index: {}]   ;;  %s5000_s2 = inlined_call_operand.vmem [shape: f32[32,16], index: 2, kind: input, shape index: {}]   ;;  %s5001_s3 = inlined_call_operand.vmem [shape: f32[16,128], index: 3, kind: input, shape index: {}]   ;;  %s5002_s4 = inlined_call_operand.vmem [shape: f32[16,128], index: 4, kind: input, shape index: {}]   ;;  %s5003_s5 = inlined_call_operand.vmem [shape: f32[32,128], index: 5, kind: input, shape index: {}]   ;;  %s5004_s6 = inlined_call_operand.hbm [shape: f32[1,128], index: 6, kind: input, shape index: {}]   ;;  %s5005_s7 = inlined_call_operand.vmem [shape: f32[32,128], index: 7, kind: input, shape index: {}]   ;;  %s5006_s8 = inlined_call_operand.vmem [shape: f32[32,128], index: 8, kind: input, shape index: {}]   ;;  %s5007_s9 = inlined_call_operand.vmem [shape: f32[32,128], index: 9, kind: input, shape index: {}]   ;;  %s5008_s10 = inlined_call_operand.hbm [shape: f32[1,128], index: 10, kind: input, shape index: {}]   ;;  %s5009_s11 = inlined_call_operand.vmem [shape: f32[32,16], index: 11, kind: input, shape index: {}]   ;;  %s5010_s12 = inlined_call_operand.hbm [shape: f32[4,16], index: 12, kind: input, shape index: {}]   ;;  %s5011_s13 = inlined_call_operand.hbm [shape: f32[4,4,32], index: 13, kind: output, shape index: {0}]   ;;  %s5012_s14 = inlined_call_operand.hbm [shape: f32[4,4,8], index: 14, kind: output, shape index: {1}]  }
   0x1   :  { %21 = vsyncpa [#allocation6], 0 }
   0x2   :  { %22 = vsyncpa [#allocation4], 0 }
   0x3   :  { %23 = vsyncpa [#allocation10], 0  ;;  %s4203_s29 = smov [#allocation5]   ;;  %s4204_s15 = smov [#allocation2]  }
   0x4   :  { %s58_s30 = sshll.u32 %s4203_s29, 4  ;;  %s42_s16 = sshll.u32 %s4204_s15, 4  ;;  %s59_s30 = int_to_ptr.vmem [resolvable:$true] %s58_s30  ;;  %s43_s16 = int_to_ptr.vmem [resolvable:$true] %s42_s16 }
   0x5   :  { %s4103_s17 = scalar_lea.vmem %s59_s30, 16  ;;  %s4107_s18 = scalar_lea.vmem %s59_s30, 32 }
   0x6   :  { %p4104_p0 = scmp.ne.s32.totalorder %s59_s30, %s4103_s17  ;;  %p4108_p1 = scmp.lt.s32.totalorder %s59_s30, %s59_s30 }
   0x7   :  { %p4109_p2 = scmp.lt.s32.totalorder %s4107_s18, %s4103_s17 }
   0x9   :  { %p4110_p3 = por %p4109_p2, %p4108_p1 }
   0xb   :  { %p4111_p4 = pnand %p4110_p3, %p4104_p0 }
   0xd   :  { %4114 = shalt.err (!%p4111_p4)
}
   0xe   :  { %61 = dma.hbm_to_vmem [thread:$0]  %s5008_s10, 16, %s59_s30, [#allocation6]  }
   0xf   :  { %s4123_s21 = scalar_lea.vmem %s43_s16, 16  ;;  %s4127_s22 = scalar_lea.vmem %s43_s16, 32 }
  0x10   :  { %p4124_p5 = scmp.ne.s32.totalorder %s43_s16, %s4123_s21  ;;  %p4128_p6 = scmp.lt.s32.totalorder %s43_s16, %s43_s16 }
  0x11   :  { %p4129_p7 = scmp.lt.s32.totalorder %s4127_s22, %s4123_s21 }
  0x13   :  { %p4130_p8 = por %p4129_p7, %p4128_p6 }
  0x15   :  { %p4131_p9 = pnand %p4130_p8, %p4124_p5 }
  0x17   :  { %4134 = shalt.err (!%p4131_p9)
}
  0x18   :  { %45 = dma.hbm_to_vmem [thread:$0]  %s5004_s6, 16, %s43_s16, [#allocation3]  }
  0x19   :  { %s4205_s25 = smov [#allocation7]  }
  0x1a   :  { %s70_s26 = sshll.u32 %s4205_s25, 4  ;;  %s71_s26 = int_to_ptr.vmem [resolvable:$true] %s70_s26 }
  0x1b   :  { %s4143_s27 = scalar_lea.vmem %s71_s26, 64  ;;  %p4148_p11 = scmp.lt.s32.totalorder %s71_s26, %s71_s26 }
  0x1c   :  { %p4144_p10 = scmp.ne.s32.totalorder %s71_s26, %s4143_s27  ;;  %p4149_p12 = scmp.lt.s32.totalorder %s4143_s27, %s4143_s27 }
  0x1e   :  { %p4150_p13 = por %p4149_p12, %p4148_p11 }
  0x20   :  { %p4151_p0 = pnand %p4150_p13, %p4144_p10 }
  0x22   :  { %4154 = shalt.err (!%p4151_p0)
}
  0x23   :  { %73 = dma.hbm_to_vmem [thread:$0]  %s5010_s12, 64, %s71_s26, [#allocation6]  }
  0x24   :  { %4195 = dma.done.wait [#allocation3], 16  }
  0x25   :  { %4196 = vsyncadd [#allocation3], 4294967280 }
  0x26   :  { %4197 = dma.done.wait [#allocation6], 80  }
  0x27   :  { %4198 = vsyncadd [#allocation6], 4294967216  ;;  %v4206_v0 = vmov 0   ;;  %v85_v1 = vld [vmem:[%s4998_s0 + $0x10] sm:$0xff]  ;;  %v83_v2 = vld [vmem:[%s4998_s0] sm:$0xff]  ;;  %v4207_v9 = vmov 0.0   ;;  %v87_v10 = vlaneseq }
  0x28   :  { %3942 = vset.pattern.permute.xlu1 %v4206_v0  ;;  %3941 = vset.pattern.permute.xlu0 %v4206_v0  ;;  %v116_v3 = vld [vmem:[%s5000_s2 + $0x18] sm:$0xff]  ;;  %v115_v4 = vld [vmem:[%s5000_s2 + $0x10] sm:$0xff]  ;;  %v84_v6 = vld [vmem:[%s4998_s0 + $0x8] sm:$0xff]  ;;  %vm117_vm0 = vcmask 261120   ;;  %vm4208_vm5 = vmmov 0   ;;  %vm224_vm6 = vcmask 130048  }
  0x29   :  { %96 = vperm.xlu1 %3942, %v85_v1   ;;  %90 = vperm.xlu0 %3941, %v83_v2   ;;  %v86_v5 = vld [vmem:[%s4998_s0 + $0x18] sm:$0xff]  ;;  %v114_v7 = vld [vmem:[%s5000_s2 + $0x8] sm:$0xff]  ;;  %v113_v8 = vld [vmem:[%s5000_s2] sm:$0xff]  ;;  %v88_v11 = vand.u32 127, %v87_v10  ;;  %s4210_s20 = smov 32   ;;  %vm2332_vm7 = vcmask 1041409  }
  0x2a   :  { %3608 = vmatprep.subr.mxu0 %v116_v3  ;;  %v216_v20 = vld [vmem:[%s5001_s3 + $0x8] sm:$0xff]  ;;  %v215_v21 = vld [vmem:[%s5001_s3] sm:$0xff]  ;;  %v4344_v23 = vld [vmem:[%s5003_s5 + $0x18] sm:$0xff]  ;;  %vm2335_vm8 = vcmask 1042434   ;;  %vm2338_vm9 = vcmask 1043459   ;;  %vm2341_vm10 = vcmask 1044484  }
  0x2b   :  { %3609 = vmatpush3.msra.mxu0 %v116_v3  ;;  %3622 = vmatprep.subr.mxu1 %v216_v20  ;;  %v335_v22 = vld [vmem:[%s5002_s4 + $0x8] sm:$0xff]  ;;  %v4351_v24 = vld [vmem:[%s5003_s5 + $0x10] sm:$0xff]  ;;  %v4365_v26 = vld [vmem:[%s5003_s5] sm:$0xff]  ;;  %vm2344_vm11 = vcmask 1045509   ;;  %vm2347_vm12 = vcmask 1046534   ;;  %vm2350_vm13 = vcmask 1047559  }
  0x2c   :  { %3610 = vmatprep.subr.mxu0 %v115_v4  ;;  %3623 = vmatpush3.msra.mxu1 %v216_v20  ;;  %v4357_v25 = vld [vmem:[%s5003_s5 + $0x8] sm:$0xff]  ;;  %v334_v29 = vld [vmem:[%s5002_s4] sm:$0xff]  ;;  %s4209_s4 = smov 64   ;;  %vm2507_vm15 = vcmask 60416  }
  0x2d   :  { %99 = vperm.xlu1 %3942, %v86_v5   ;;  %93 = vperm.xlu0 %3941, %v84_v6   ;;  %v3392_v34 = vld [vmem:[#allocation2] ss:$0 sm:$0xff] }
  0x2e   :  { %3611 = vmatpush3.msra.mxu0 %v115_v4  ;;  %3624 = vmatprep.subr.mxu1 %v215_v21 }
  0x2f   :  { %3612 = vmatprep.subr.mxu0 %v114_v7  ;;  %3625 = vmatpush3.msra.mxu1 %v215_v21 }
  0x30   :  { %3613 = vmatpush3.msra.mxu0 %v114_v7  ;;  %3632 = vmatprep.subr.mxu1 %v335_v22 }
  0x31   :  { %3614 = vmatprep.subr.mxu0 %v113_v8 }
  0x32   :  { %3615 = vmatpush3.msra.mxu0 %v113_v8 }
  0x33   :  { %3642 = vmatprep.subr.mxu0 %v4207_v9 }
  0xa4   :  { %v97_v12 = vpop.permute.xlu1 %96  ;;  %v91_v13 = vpop.permute.xlu0 %90 }
  0xa5   :  { %vm101_vm1 = vcmp.eq.s32.totalorder %v91_v13, %v88_v11  ;;  %vm103_vm2 = vcmp.eq.s32.totalorder %v97_v12, %v88_v11 }
  0xa6   :  { %v3384_v14 = vsel %vm101_vm1, 1.0, %v4207_v9  ;;  %v3386_v17 = vsel %vm103_vm2, 1.0, %v4207_v9  ;;  %vm3341_vm1 = vcmask 257024  }
  0xa7   :  { %3616 = vmatprep.mubr.msk.f32.mxu0 %vm117_vm0, %v3384_v14 }
  0xa8   :  { %v100_v15 = vpop.permute.xlu1 %99  ;;  %v94_v16 = vpop.permute.xlu0 %93 }
  0xa9   :  { %vm102_vm3 = vcmp.eq.s32.totalorder %v94_v16, %v88_v11  ;;  %vm104_vm4 = vcmp.eq.s32.totalorder %v100_v15, %v88_v11 }
  0xaa   :  { %v3385_v18 = vsel %vm102_vm3, 1.0, %v4207_v9  ;;  %v3387_v19 = vsel %vm104_vm4, 1.0, %v4207_v9 }
  0xab   :  { %3617 = vmatmul.mubr.msk.f32.vlgmr.msra.gmra.mxu0 %vm117_vm0, %v3385_v18 }
  0xac   :  { %3619 = vmatprep.mubr.msk.f32.mxu0 %vm117_vm0, %v3386_v17  ;;  %3643 = vmatpush3.msra.mxu0 %v4344_v23 }
  0xad   :  { %3644 = vmatprep.subr.mxu0 %v4207_v9 }
  0xae   :  { %3645 = vmatpush3.msra.mxu0 %v4351_v24 }
  0xaf   :  { %3620 = vmatmul.mubr.msk.f32.gmra.mxu0 %vm117_vm0, %v3387_v19  ;;  %3646 = vmatprep.subr.mxu0 %v4207_v9 }
  0xb0   :  { %3647 = vmatpush3.msra.mxu0 %v4357_v25  ;;  %3650 = vmatprep.mubr.msk.f32.mxu0 %vm4208_vm5, %v4207_v9 }
  0xb1   :  { %3648 = vmatprep.subr.mxu0 %v4207_v9 }
  0xb2   :  { %3649 = vmatpush3.msra.mxu0 %v4365_v26 }
  0xb3   :  { %3651 = vmatmul.mubr.f32.vlgmr.msra.gmra.mxu0 %v4207_v9  ;;  %3664 = vmatprep.subr.mxu0 %v4207_v9 }
  0xb4   :  { %3665 = vmatpush3.msra.mxu0 %v4344_v23  ;;  %3672 = vmatprep.mubr.msk.f32.mxu0 %vm4208_vm5, %v4207_v9 }
  0xb5   :  { %3666 = vmatprep.subr.mxu0 %v4207_v9 }
  0xb6   :  { %3667 = vmatpush3.msra.mxu0 %v4351_v24 }
  0xb7   :  { %3668 = vmatprep.subr.mxu0 %v4207_v9 }
  0xb8   :  { %3669 = vmatpush3.msra.mxu0 %v4357_v25 }
  0xb9   :  { %3670 = vmatprep.subr.mxu0 %v4207_v9 }
  0xba   :  { %3671 = vmatpush3.msra.mxu0 %v4365_v26 }
  0xbb   :  { %3686 = vmatprep.subr.mxu0 %v4207_v9 }
 0x16b   :  { %v3618_v27 = vpop.f32.mrf.mxu0 }
 0x16d   :  { %v196_v28 = vpop.f32.mrf.mxu0 }
 0x16e   :  { %3626 = vmatprep.mubr.msk.f32.mxu1 %vm224_vm6, %v196_v28 }
 0x16f   :  { %v3621_v30 = vpop.f32.mrf.mxu0  ;;  %3627 = vmatmul.mubr.msk.f32.vlgmr.msra.gmra.mxu1 %vm224_vm6, %v3618_v27 }
 0x170   :  { %3633 = vmatpush3.msra.mxu1 %v335_v22 }
 0x171   :  { %v206_v31 = vpop.f32.mrf.mxu0  ;;  %3634 = vmatprep.subr.mxu1 %v334_v29 }
 0x172   :  { %3629 = vmatprep.mubr.msk.f32.mxu1 %vm224_vm6, %v206_v31  ;;  %3635 = vmatpush3.msra.mxu1 %v334_v29 }
 0x173   :  { %3630 = vmatmul.mubr.msk.f32.gmra.mxu1 %vm224_vm6, %v3621_v30  ;;  %3653 = vmatprep.subr.mxu1 %v4207_v9  ;;  %v507_v32 = vpop.f32.mrf.mxu0 }
 0x174   :  { %3636 = vmatprep.mubr.msk.f32.mxu1 %vm224_vm6, %v196_v28 }
 0x175   :  { %v3652_v33 = vpop.f32.mrf.mxu0 }
 0x177   :  { %3637 = vmatmul.mubr.msk.f32.vlgmr.msra.gmra.mxu1 %vm224_vm6, %v3618_v27 }
 0x178   :  { %3639 = vmatprep.mubr.msk.f32.mxu1 %vm224_vm6, %v206_v31  ;;  %3654 = vmatpush3.msra.mxu1 %v4344_v23 }
 0x179   :  { %3655 = vmatprep.subr.mxu1 %v4207_v9 }
 0x17a   :  { %3656 = vmatpush3.msra.mxu1 %v4351_v24 }
 0x17b   :  { %3640 = vmatmul.mubr.msk.f32.gmra.mxu1 %vm224_vm6, %v3621_v30  ;;  %3657 = vmatprep.subr.mxu1 %v4207_v9 }
 0x17c   :  { %3658 = vmatpush3.msra.mxu1 %v4357_v25  ;;  %3661 = vmatprep.mubr.msk.f32.mxu1 %vm4208_vm5, %v4207_v9 }
 0x17d   :  { %3659 = vmatprep.subr.mxu1 %v4207_v9 }
 0x17e   :  { %3660 = vmatpush3.msra.mxu1 %v4365_v26 }
 0x17f   :  { %3675 = vmatprep.subr.mxu1 %v4207_v9 }
 0x22f   :  { %v3628_v35 = vpop.f32.mrf.mxu1 }
 0x230   :  { %v4404_v36 = vadd.f32 %v3628_v35, %v3392_v34 }
 0x231   :  { %v303_v37 = vpop.f32.mrf.mxu1 }
 0x232   :  { %v304_v40 = vadd.f32 %v3392_v34, %v303_v37 }
 0x233   :  { %v3631_v38 = vpop.f32.mrf.mxu1 }
 0x234   :  { %v319_v39 = vadd.f32 %v3631_v38, %v3392_v34  ;;  %v326_v47 = vcombine.high %v304_v40, %v304_v40 }
 0x235   :  { %v313_v41 = vpop.f32.mrf.mxu1 }
 0x236   :  { %v314_v42 = vadd.f32 %v3392_v34, %v313_v41  ;;  %v329_v44 = vcombine.high %v319_v39, %v319_v39 }
 0x237   :  { %v3638_v43 = vpop.f32.mrf.mxu1 }
 0x238   :  { %v328_v45 = vcombine.high %v314_v42, %v314_v42  ;;  %v426_v46 = vcombine.high %v3638_v43, %v3638_v43 }
 0x239   :  { %v402_v48 = vpop.f32.mrf.mxu1 }
 0x23a   :  { %v4406_v49 = vadd.f32 %v3638_v43, %v328_v45  ;;  %v425_v50 = vcombine.high %v402_v48, %v402_v48  ;;  %v4408_v51 = vadd.f32 %v402_v48, %v329_v44  ;;  %v4410_v52 = vadd.f32 %v426_v46, %v314_v42 }
 0x23b   :  { %v3641_v53 = vpop.f32.mrf.mxu1 }
 0x23c   :  { %v428_v54 = vcombine.high %v3641_v53, %v3641_v53  ;;  %v536_v55 = vadd.f32 %v3641_v53, %v326_v47  ;;  %v4412_v56 = vadd.f32 %v425_v50, %v319_v39 }
 0x23d   :  { %v4432_v11 = vpop.f32.mrf.mxu1 }
 0x23e   :  { %v437_v57 = vadd.f32 %v428_v54, %v304_v40  ;;  %v427_v33 = vcombine.high %v4432_v11, %v4432_v11 }
 0x240   :  { %v511_v58 = vadd.f32 %v507_v32, %v437_v57  ;;  %v637_v34 = vadd.f32 %v427_v33, %v4404_v36  ;;  %v327_v57 = vcombine.high %v4404_v36, %v4404_v36 }
 0x242   :  { %3943 = vtanh.f32 %v511_v58  ;;  %v3401_v60 = vmul.f32 -1.442695, %v511_v58  ;;  %v738_v58 = vadd.f32 %v4432_v11, %v327_v57 }
 0x244   :  { %3945 = vpow2.f32 %v3401_v60 }
 0x24f   :  { %v3944_v59 = vpop.eup %3943 }
 0x250   :  { %521 = vrot.lane.b32.xlu0 %v3944_v59, %s4209_s4 }
 0x251   :  { %v3946_v61 = vpop.eup %3945 }
 0x252   :  { %v515_v62 = vadd.f32 1.0, %v3946_v61 }
 0x254   :  { %3947 = vrcp.f32 %v515_v62 }
 0x261   :  { %v3948_v63 = vpop.eup %3947 }
 0x262   :  { %v519_v2 = vmul.f32 0.0, %v3948_v63 }
 0x2c2   :  { %v522_v0 = vpop.permute.xlu0 %521 }
 0x2c3   :  { %v524_v1 = vmul.f32 %v3948_v63, %v522_v0 }
 0x2c5   :  { %526 = vrot.lane.b32.xlu1 %v524_v1, %s4210_s20 }
 0x337   :  { %v527_v3 = vpop.permute.xlu1 %526 }
 0x338   :  { %v529_v4 = vadd.f32 %v527_v3, %v519_v2 }
 0x33a   :  { %3949 = vtanh.f32 %v529_v4 }
 0x347   :  { %v3950_v5 = vpop.eup %3949 }
 0x348   :  { %532 = vrot.lane.b32.xlu0 %v3950_v5, %s4209_s4 }
 0x3ba   :  { %v533_v6 = vpop.permute.xlu0 %532 }
 0x3bb   :  { %v535_v7 = vmul.f32 %v3948_v63, %v533_v6 }
 0x3bd   :  { %538 = vrot.lane.b32.xlu1 %v535_v7, %s4210_s20 }
 0x42f   :  { %v4418_v8 = vpop.permute.xlu1 %538 }
 0x430   :  { %3662 = vmatmul.mubr.msk.f32.vlgmr.msra.gmra.mxu1 %vm117_vm0, %v4418_v8 }
 0x431   :  { %3676 = vmatpush3.msra.mxu1 %v4344_v23  ;;  %3683 = vmatprep.mubr.msk.f32.mxu1 %vm4208_vm5, %v4207_v9 }
 0x432   :  { %3677 = vmatprep.subr.mxu1 %v4207_v9 }
 0x433   :  { %3678 = vmatpush3.msra.mxu1 %v4351_v24 }
 0x434   :  { %3679 = vmatprep.subr.mxu1 %v4207_v9 }
 0x435   :  { %3680 = vmatpush3.msra.mxu1 %v4357_v25 }
 0x436   :  { %3681 = vmatprep.subr.mxu1 %v4207_v9 }
 0x437   :  { %3682 = vmatpush3.msra.mxu1 %v4365_v26 }
 0x438   :  { %3697 = vmatprep.subr.mxu1 %v4207_v9 }
 0x4f0   :  { %v608_v12 = vpop.f32.mrf.mxu1 }
 0x4f1   :  { %v612_v13 = vadd.f32 %v608_v12, %v536_v55 }
 0x4f2   :  { %v3663_v14 = vpop.f32.mrf.mxu1 }
 0x4f3   :  { %3951 = vtanh.f32 %v612_v13  ;;  %v3403_v16 = vmul.f32 -1.442695, %v612_v13 }
 0x4f5   :  { %3953 = vpow2.f32 %v3403_v16 }
 0x500   :  { %v3952_v15 = vpop.eup %3951 }
 0x501   :  { %622 = vrot.lane.b32.xlu0 %v3952_v15, %s4209_s4 }
 0x502   :  { %v3954_v17 = vpop.eup %3953 }
 0x503   :  { %v616_v18 = vadd.f32 1.0, %v3954_v17 }
 0x505   :  { %3955 = vrcp.f32 %v616_v18 }
 0x512   :  { %v3956_v19 = vpop.eup %3955 }
 0x513   :  { %v620_v22 = vmul.f32 %v3956_v19, %v529_v4 }
 0x573   :  { %v623_v20 = vpop.permute.xlu0 %622 }
 0x574   :  { %v625_v21 = vmul.f32 %v3956_v19, %v623_v20 }
 0x576   :  { %627 = vrot.lane.b32.xlu1 %v625_v21, %s4210_s20 }
 0x5e8   :  { %v628_v27 = vpop.permute.xlu1 %627 }
 0x5e9   :  { %v630_v28 = vadd.f32 %v628_v27, %v620_v22 }
 0x5eb   :  { %3957 = vtanh.f32 %v630_v28 }
 0x5f8   :  { %v3958_v29 = vpop.eup %3957 }
 0x5f9   :  { %633 = vrot.lane.b32.xlu0 %v3958_v29, %s4209_s4 }
 0x66b   :  { %v634_v30 = vpop.permute.xlu0 %633 }
 0x66c   :  { %v636_v31 = vmul.f32 %v3956_v19, %v634_v30 }
 0x66e   :  { %639 = vrot.lane.b32.xlu1 %v636_v31, %s4210_s20 }
 0x6e0   :  { %v4438_v32 = vpop.permute.xlu1 %639 }
 0x6e1   :  { %3673 = vmatmul.mubr.msk.f32.vlgmr.msra.gmra.mxu0 %vm117_vm0, %v4438_v32 }
 0x6e2   :  { %3687 = vmatpush3.msra.mxu0 %v4344_v23  ;;  %3694 = vmatprep.mubr.msk.f32.mxu0 %vm4208_vm5, %v4207_v9 }
 0x6e3   :  { %3688 = vmatprep.subr.mxu0 %v4207_v9 }
 0x6e4   :  { %3689 = vmatpush3.msra.mxu0 %v4351_v24 }
 0x6e5   :  { %3690 = vmatprep.subr.mxu0 %v4207_v9 }
 0x6e6   :  { %3691 = vmatpush3.msra.mxu0 %v4357_v25 }
 0x6e7   :  { %3692 = vmatprep.subr.mxu0 %v4207_v9 }
 0x6e8   :  { %3693 = vmatpush3.msra.mxu0 %v4365_v26 }
 0x6e9   :  { %3708 = vmatprep.subr.mxu0 %v4207_v9 }
 0x7a1   :  { %v709_v35 = vpop.f32.mrf.mxu0 }
 0x7a2   :  { %v713_v37 = vadd.f32 %v709_v35, %v637_v34 }
 0x7a3   :  { %v3674_v38 = vpop.f32.mrf.mxu0 }
 0x7a4   :  { %3959 = vtanh.f32 %v713_v37  ;;  %v3405_v40 = vmul.f32 -1.442695, %v713_v37 }
 0x7a6   :  { %3961 = vpow2.f32 %v3405_v40 }
 0x7b1   :  { %v3960_v39 = vpop.eup %3959 }
 0x7b2   :  { %723 = vrot.lane.b32.xlu0 %v3960_v39, %s4209_s4 }
 0x7b3   :  { %v3962_v41 = vpop.eup %3961 }
 0x7b4   :  { %v717_v42 = vadd.f32 1.0, %v3962_v41 }
 0x7b6   :  { %3963 = vrcp.f32 %v717_v42 }
 0x7c3   :  { %v3964_v43 = vpop.eup %3963 }
 0x7c4   :  { %v721_v46 = vmul.f32 %v3964_v43, %v630_v28 }
 0x824   :  { %v724_v44 = vpop.permute.xlu0 %723 }
 0x825   :  { %v726_v45 = vmul.f32 %v3964_v43, %v724_v44 }
 0x827   :  { %728 = vrot.lane.b32.xlu1 %v726_v45, %s4210_s20 }
 0x899   :  { %v729_v47 = vpop.permute.xlu1 %728 }
 0x89a   :  { %v731_v48 = vadd.f32 %v729_v47, %v721_v46 }
 0x89c   :  { %3965 = vtanh.f32 %v731_v48 }
 0x8a9   :  { %v3966_v50 = vpop.eup %3965 }
 0x8aa   :  { %734 = vrot.lane.b32.xlu0 %v3966_v50, %s4209_s4 }
 0x91c   :  { %v735_v53 = vpop.permute.xlu0 %734 }
 0x91d   :  { %v737_v54 = vmul.f32 %v3964_v43, %v735_v53 }
 0x91f   :  { %740 = vrot.lane.b32.xlu1 %v737_v54, %s4210_s20 }
 0x991   :  { %v4459_v55 = vpop.permute.xlu1 %740 }
 0x992   :  { %3684 = vmatmul.mubr.msk.f32.vlgmr.msra.gmra.mxu1 %vm117_vm0, %v4459_v55 }
 0x993   :  { %3698 = vmatpush3.msra.mxu1 %v4344_v23  ;;  %3705 = vmatprep.mubr.msk.f32.mxu1 %vm4208_vm5, %v4207_v9 }
 0x994   :  { %3699 = vmatprep.subr.mxu1 %v4207_v9 }
 0x995   :  { %3700 = vmatpush3.msra.mxu1 %v4351_v24 }
 0x996   :  { %3701 = vmatprep.subr.mxu1 %v4207_v9 }
 0x997   :  { %3702 = vmatpush3.msra.mxu1 %v4357_v25 }
 0x998   :  { %3703 = vmatprep.subr.mxu1 %v4207_v9 }
 0x999   :  { %3704 = vmatpush3.msra.mxu1 %v4365_v26 }
 0x99a   :  { %3719 = vmatprep.subr.mxu1 %v4207_v9 }
 0xa52   :  { %v810_v59 = vpop.f32.mrf.mxu1 }
 0xa53   :  { %v814_v60 = vadd.f32 %v810_v59, %v738_v58 }
 0xa54   :  { %v3685_v61 = vpop.f32.mrf.mxu1 }
 0xa55   :  { %3967 = vtanh.f32 %v814_v60  ;;  %v3407_v63 = vmul.f32 -1.442695, %v814_v60 }
 0xa57   :  { %3969 = vpow2.f32 %v3407_v63 }
 0xa62   :  { %v3968_v62 = vpop.eup %3967 }
 0xa63   :  { %824 = vrot.lane.b32.xlu0 %v3968_v62, %s4209_s4 }
 0xa64   :  { %v3970_v0 = vpop.eup %3969 }
 0xa65   :  { %v818_v1 = vadd.f32 1.0, %v3970_v0 }
 0xa67   :  { %3971 = vrcp.f32 %v818_v1 }
 0xa74   :  { %v3972_v2 = vpop.eup %3971 }
 0xa75   :  { %v822_v36 = vmul.f32 %v3972_v2, %v731_v48 }
 0xad5   :  { %v825_v3 = vpop.permute.xlu0 %824 }
 0xad6   :  { %v827_v4 = vmul.f32 %v3972_v2, %v825_v3 }
 0xad8   :  { %829 = vrot.lane.b32.xlu1 %v827_v4, %s4210_s20 }
 0xb4a   :  { %v830_v5 = vpop.permute.xlu1 %829 }
 0xb4b   :  { %v832_v6 = vadd.f32 %v830_v5, %v822_v36 }
 0xb4d   :  { %3973 = vtanh.f32 %v832_v6 }
 0xb5a   :  { %v3974_v7 = vpop.eup %3973 }
 0xb5b   :  { %835 = vrot.lane.b32.xlu0 %v3974_v7, %s4209_s4 }
 0xbcd   :  { %v836_v11 = vpop.permute.xlu0 %835 }
 0xbce   :  { %v838_v12 = vmul.f32 %v3972_v2, %v836_v11 }
 0xbd0   :  { %841 = vrot.lane.b32.xlu1 %v838_v12, %s4210_s20 }
 0xc42   :  { %v4480_v13 = vpop.permute.xlu1 %841 }
 0xc43   :  { %3695 = vmatmul.mubr.msk.f32.vlgmr.msra.gmra.mxu0 %vm117_vm0, %v4480_v13 }
 0xc44   :  { %3709 = vmatpush3.msra.mxu0 %v4344_v23  ;;  %3716 = vmatprep.mubr.msk.f32.mxu0 %vm4208_vm5, %v4207_v9 }
 0xc45   :  { %3710 = vmatprep.subr.mxu0 %v4207_v9 }
 0xc46   :  { %3711 = vmatpush3.msra.mxu0 %v4351_v24 }
 0xc47   :  { %3712 = vmatprep.subr.mxu0 %v4207_v9 }
 0xc48   :  { %3713 = vmatpush3.msra.mxu0 %v4357_v25 }
 0xc49   :  { %3714 = vmatprep.subr.mxu0 %v4207_v9 }
 0xc4a   :  { %3715 = vmatpush3.msra.mxu0 %v4365_v26 }
 0xd03   :  { %v911_v14 = vpop.f32.mrf.mxu0 }
 0xd04   :  { %v915_v15 = vadd.f32 %v911_v14, %v4410_v52 }
 0xd05   :  { %v3696_v16 = vpop.f32.mrf.mxu0 }
 0xd06   :  { %3975 = vtanh.f32 %v915_v15  ;;  %v3409_v18 = vmul.f32 -1.442695, %v915_v15 }
 0xd08   :  { %3977 = vpow2.f32 %v3409_v18 }
 0xd13   :  { %v3976_v17 = vpop.eup %3975 }
 0xd14   :  { %925 = vrot.lane.b32.xlu0 %v3976_v17, %s4209_s4 }
 0xd15   :  { %v3978_v19 = vpop.eup %3977 }
 0xd16   :  { %v919_v20 = vadd.f32 1.0, %v3978_v19 }
 0xd18   :  { %3979 = vrcp.f32 %v919_v20 }
 0xd25   :  { %v3980_v21 = vpop.eup %3979 }
 0xd26   :  { %v923_v28 = vmul.f32 %v3980_v21, %v832_v6 }
 0xd86   :  { %v926_v22 = vpop.permute.xlu0 %925 }
 0xd87   :  { %v928_v27 = vmul.f32 %v3980_v21, %v926_v22  ;;  %v1264_v22 = vld [vmem:[%s5005_s7 + $0x10] sm:$0xff] }
 0xd89   :  { %930 = vrot.lane.b32.xlu1 %v928_v27, %s4210_s20  ;;  %v1392_v27 = vld [vmem:[%s5006_s8 + $0x10] sm:$0xff] }
 0xdfb   :  { %v931_v29 = vpop.permute.xlu1 %930 }
 0xdfc   :  { %v933_v30 = vadd.f32 %v931_v29, %v923_v28  ;;  %v1263_v29 = vld [vmem:[%s5005_s7 + $0x8] sm:$0xff] }
 0xdfe   :  { %3981 = vtanh.f32 %v933_v30 }
 0xe0b   :  { %v3982_v52 = vpop.eup %3981 }
 0xe0c   :  { %936 = vrot.lane.b32.xlu0 %v3982_v52, %s4209_s4  ;;  %v1262_v52 = vld [vmem:[%s5005_s7] sm:$0xff] }
 0xe7e   :  { %v937_v31 = vpop.permute.xlu0 %936 }
 0xe7f   :  { %v939_v33 = vmul.f32 %v3980_v21, %v937_v31  ;;  %v1393_v21 = vld [vmem:[%s5006_s8 + $0x18] sm:$0xff]  ;;  %v1390_v31 = vld [vmem:[%s5006_s8] sm:$0xff] }
 0xe81   :  { %942 = vrot.lane.b32.xlu1 %v939_v33, %s4210_s20 }
 0xef3   :  { %v4498_v34 = vpop.permute.xlu1 %942 }
 0xef4   :  { %3706 = vmatmul.mubr.msk.f32.vlgmr.msra.gmra.mxu1 %vm117_vm0, %v4498_v34 }
 0xef5   :  { %3720 = vmatpush3.msra.mxu1 %v4344_v23  ;;  %3727 = vmatprep.mubr.msk.f32.mxu1 %vm4208_vm5, %v4207_v9 }
 0xef6   :  { %3721 = vmatprep.subr.mxu1 %v4207_v9 }
 0xef7   :  { %3722 = vmatpush3.msra.mxu1 %v4351_v24 }
 0xef8   :  { %3723 = vmatprep.subr.mxu1 %v4207_v9 }
 0xef9   :  { %3724 = vmatpush3.msra.mxu1 %v4357_v25 }
 0xefa   :  { %3725 = vmatprep.subr.mxu1 %v4207_v9 }
 0xefb   :  { %3726 = vmatpush3.msra.mxu1 %v4365_v26 }
 0xefc   :  { %3744 = vmatprep.subr.mxu1 %v1393_v21 }
 0xfb4   :  { %v1012_v35 = vpop.f32.mrf.mxu1 }
 0xfb5   :  { %v1016_v37 = vadd.f32 %v1012_v35, %v4406_v49 }
 0xfb6   :  { %v3707_v38 = vpop.f32.mrf.mxu1 }
 0xfb7   :  { %3983 = vtanh.f32 %v1016_v37  ;;  %v3411_v39 = vmul.f32 -1.442695, %v1016_v37 }
 0xfb9   :  { %3985 = vpow2.f32 %v3411_v39 }
 0xfc4   :  { %v3984_v23 = vpop.eup %3983 }
 0xfc5   :  { %1026 = vrot.lane.b32.xlu0 %v3984_v23, %s4209_s4 }
 0xfc6   :  { %v3986_v40 = vpop.eup %3985 }
 0xfc7   :  { %v1020_v24 = vadd.f32 1.0, %v3986_v40 }
 0xfc9   :  { %3987 = vrcp.f32 %v1020_v24  ;;  %v1257_v24 = vsel %vm224_vm6, %v4480_v13, %v4498_v34 }
 0xfd6   :  { %v3988_v41 = vpop.eup %3987 }
 0xfd7   :  { %v1024_v43 = vmul.f32 %v3988_v41, %v933_v30  ;;  %v1391_v30 = vld [vmem:[%s5006_s8 + $0x8] sm:$0xff] }
0x1037   :  { %v1027_v42 = vpop.permute.xlu0 %1026 }
0x1038   :  { %v1029_v25 = vmul.f32 %v3988_v41, %v1027_v42  ;;  %v1258_v42 = vsel %vm224_vm6, %v4498_v34, %v4480_v13 }
0x103a   :  { %1031 = vrot.lane.b32.xlu1 %v1029_v25, %s4210_s20 }
0x10ac   :  { %v1032_v26 = vpop.permute.xlu1 %1031 }
0x10ad   :  { %v1034_v44 = vadd.f32 %v1032_v26, %v1024_v43  ;;  %v4584_v26 = vld [vmem:[%s5007_s9 + $0x18] sm:$0xff] }
0x10af   :  { %3989 = vtanh.f32 %v1034_v44 }
0x10bc   :  { %v3990_v49 = vpop.eup %3989 }
0x10bd   :  { %1037 = vrot.lane.b32.xlu0 %v3990_v49, %s4209_s4  ;;  %v3416_v49 = vld [vmem:[#allocation5] ss:$0 sm:$0xff] }
0x112f   :  { %v1038_v45 = vpop.permute.xlu0 %1037 }
0x1130   :  { %v1040_v46 = vmul.f32 %v3988_v41, %v1038_v45 }
0x1132   :  { %1043 = vrot.lane.b32.xlu1 %v1040_v46, %s4210_s20 }
0x11a4   :  { %v4516_v47 = vpop.permute.xlu1 %1043 }
0x11a5   :  { %3717 = vmatmul.mubr.msk.f32.vlgmr.msra.gmra.mxu0 %vm117_vm0, %v4516_v47  ;;  %v1256_v37 = vsel %vm224_vm6, %v4459_v55, %v4516_v47  ;;  %v1259_v23 = vsel %vm224_vm6, %v4516_v47, %v4459_v55 }
0x11a6   :  { %v1282_v25 = vcombine.low %v1256_v37, %v1257_v24  ;;  %v1283_v43 = vcombine.low %v1258_v42, %v1259_v23 }
0x1265   :  { %v1113_v48 = vpop.f32.mrf.mxu0 }
0x1266   :  { %v1117_v50 = vadd.f32 %v1113_v48, %v4412_v56 }
0x1267   :  { %v3718_v53 = vpop.f32.mrf.mxu0 }
0x1268   :  { %3991 = vtanh.f32 %v1117_v50  ;;  %v3413_v57 = vmul.f32 -1.442695, %v1117_v50 }
0x126a   :  { %3993 = vpow2.f32 %v3413_v57 }
0x1275   :  { %v3992_v54 = vpop.eup %3991 }
0x1276   :  { %1127 = vrot.lane.b32.xlu0 %v3992_v54, %s4209_s4 }
0x1277   :  { %v3994_v58 = vpop.eup %3993 }
0x1278   :  { %v1121_v59 = vadd.f32 1.0, %v3994_v58 }
0x127a   :  { %3995 = vrcp.f32 %v1121_v59 }
0x1287   :  { %v3996_v60 = vpop.eup %3995 }
0x1288   :  { %v1125_v63 = vmul.f32 %v3996_v60, %v1034_v44  ;;  %v4614_v44 = vld [vmem:[%s5007_s9] sm:$0xff] }
0x12e8   :  { %v1128_v61 = vpop.permute.xlu0 %1127 }
0x12e9   :  { %v1130_v62 = vmul.f32 %v3996_v60, %v1128_v61 }
0x12eb   :  { %1132 = vrot.lane.b32.xlu1 %v1130_v62, %s4210_s20 }
0x135d   :  { %v1133_v0 = vpop.permute.xlu1 %1132 }
0x135e   :  { %v1135_v1 = vadd.f32 %v1133_v0, %v1125_v63 }
0x1360   :  { %3997 = vtanh.f32 %v1135_v1 }
0x136d   :  { %v3998_v56 = vpop.eup %3997 }
0x136e   :  { %1138 = vrot.lane.b32.xlu0 %v3998_v56, %s4209_s4 }
0x13e0   :  { %v1139_v2 = vpop.permute.xlu0 %1138 }
0x13e1   :  { %v1141_v3 = vmul.f32 %v3996_v60, %v1139_v2 }
0x13e3   :  { %1144 = vrot.lane.b32.xlu1 %v1141_v3, %s4210_s20 }
0x1455   :  { %v4525_v4 = vpop.permute.xlu1 %1144 }
0x1456   :  { %3728 = vmatmul.mubr.msk.f32.vlgmr.msra.gmra.mxu1 %vm117_vm0, %v4525_v4  ;;  %v1255_v39 = vsel %vm224_vm6, %v4438_v32, %v4525_v4  ;;  %v1260_v13 = vsel %vm224_vm6, %v4525_v4, %v4438_v32  ;;  %v4604_v32 = vld [vmem:[%s5007_s9 + $0x8] sm:$0xff] }
0x1457   :  { %3745 = vmatpush3.msra.mxu1 %v1393_v21 }
0x1458   :  { %3746 = vmatprep.subr.mxu1 %v1392_v27 }
0x1459   :  { %3747 = vmatpush3.msra.mxu1 %v1392_v27 }
0x145a   :  { %3748 = vmatprep.subr.mxu1 %v1391_v30 }
0x145b   :  { %3749 = vmatpush3.msra.mxu1 %v1391_v30 }
0x145c   :  { %3750 = vmatprep.subr.mxu1 %v1390_v31 }
0x145d   :  { %3751 = vmatpush3.msra.mxu1 %v1390_v31 }
0x145e   :  { %3769 = vmatprep.subr.mxu1 %v4207_v9 }
0x1516   :  { %v1214_v36 = vpop.f32.mrf.mxu1 }
0x1517   :  { %v1218_v5 = vadd.f32 %v1214_v36, %v4408_v51  ;;  %v1265_v51 = vld [vmem:[%s5005_s7 + $0x18] sm:$0xff] }
0x1518   :  { %v3729_v6 = vpop.f32.mrf.mxu1  ;;  %3730 = vmatprep.subr.mxu0 %v1265_v51 }
0x1519   :  { %3999 = vtanh.f32 %v1218_v5  ;;  %v3415_v11 = vmul.f32 -1.442695, %v1218_v5  ;;  %3731 = vmatpush3.msra.mxu0 %v1265_v51 }
0x151a   :  { %3732 = vmatprep.subr.mxu0 %v1264_v22 }
0x151b   :  { %4001 = vpow2.f32 %v3415_v11  ;;  %3733 = vmatpush3.msra.mxu0 %v1264_v22 }
0x151c   :  { %3734 = vmatprep.subr.mxu0 %v1263_v29 }
0x151d   :  { %3735 = vmatpush3.msra.mxu0 %v1263_v29 }
0x151e   :  { %3736 = vmatprep.subr.mxu0 %v1262_v52 }
0x151f   :  { %3737 = vmatpush3.msra.mxu0 %v1262_v52 }
0x1520   :  { %3758 = vmatprep.subr.mxu0 %v4207_v9 }
0x1526   :  { %v4000_v7 = vpop.eup %3999 }
0x1527   :  { %1228 = vrot.lane.b32.xlu0 %v4000_v7, %s4209_s4 }
0x1528   :  { %v4002_v12 = vpop.eup %4001 }
0x1529   :  { %v1222_v14 = vadd.f32 1.0, %v4002_v12 }
0x152b   :  { %4003 = vrcp.f32 %v1222_v14 }
0x1538   :  { %v4004_v15 = vpop.eup %4003 }
0x1539   :  { %v1226_v18 = vmul.f32 %v4004_v15, %v1135_v1 }
0x1599   :  { %v1229_v16 = vpop.permute.xlu0 %1228 }
0x159a   :  { %v1231_v17 = vmul.f32 %v4004_v15, %v1229_v16 }
0x159c   :  { %1233 = vrot.lane.b32.xlu1 %v1231_v17, %s4210_s20 }
0x160e   :  { %v1234_v19 = vpop.permute.xlu1 %1233 }
0x160f   :  { %v1236_v20 = vadd.f32 %v1234_v19, %v1226_v18 }
0x1611   :  { %4005 = vtanh.f32 %v1236_v20 }
0x161e   :  { %v4006_v28 = vpop.eup %4005 }
0x161f   :  { %1239 = vrot.lane.b32.xlu0 %v4006_v28, %s4209_s4 }
0x1691   :  { %v1240_v33 = vpop.permute.xlu0 %1239 }
0x1692   :  { %v1242_v35 = vmul.f32 %v4004_v15, %v1240_v33 }
0x1694   :  { %1244 = vrot.lane.b32.xlu1 %v1242_v35, %s4210_s20 }
0x1706   :  { %v1245_v38 = vpop.permute.xlu1 %1244 }
0x1707   :  { %v1254_v40 = vsel %vm224_vm6, %v4418_v8, %v1245_v38  ;;  %v1261_v55 = vsel %vm224_vm6, %v1245_v38, %v4418_v8  ;;  %v4596_v8 = vld [vmem:[%s5007_s9 + $0x10] sm:$0xff] }
0x1708   :  { %v1281_v41 = vcombine.low %v1254_v40, %v1255_v39  ;;  %v1284_v34 = vcombine.low %v1260_v13, %v1261_v55 }
0x170a   :  { %3738 = vmatprep.mubr.msk.f32.mxu0 %vm117_vm0, %v1281_v41  ;;  %3752 = vmatprep.mubr.msk.f32.mxu1 %vm117_vm0, %v1281_v41 }
0x170b   :  { %3739 = vmatmul.mubr.msk.f32.vlgmr.msra.gmra.mxu0 %vm117_vm0, %v1282_v25  ;;  %3753 = vmatmul.mubr.msk.f32.vlgmr.msra.gmra.mxu1 %vm117_vm0, %v1282_v25 }
0x170c   :  { %3741 = vmatprep.mubr.msk.f32.mxu0 %vm117_vm0, %v1283_v43  ;;  %3755 = vmatprep.mubr.msk.f32.mxu1 %vm117_vm0, %v1283_v43 }
0x170d   :  { %3759 = vmatpush3.msra.mxu0 %v4584_v26  ;;  %3770 = vmatpush3.msra.mxu1 %v4584_v26 }
0x170e   :  { %3760 = vmatprep.subr.mxu0 %v4207_v9  ;;  %3771 = vmatprep.subr.mxu1 %v4207_v9 }
0x170f   :  { %3761 = vmatpush3.msra.mxu0 %v4596_v8  ;;  %3756 = vmatmul.mubr.msk.f32.gmra.mxu1 %vm117_vm0, %v1284_v34 }
0x1710   :  { %3742 = vmatmul.mubr.msk.f32.gmra.mxu0 %vm117_vm0, %v1284_v34  ;;  %3762 = vmatprep.subr.mxu0 %v4207_v9 }
0x1711   :  { %3763 = vmatpush3.msra.mxu0 %v4604_v32  ;;  %3766 = vmatprep.mubr.msk.f32.mxu0 %vm4208_vm5, %v4207_v9 }
0x1712   :  { %3764 = vmatprep.subr.mxu0 %v4207_v9  ;;  %3772 = vmatpush3.msra.mxu1 %v4596_v8 }
0x1713   :  { %3765 = vmatpush3.msra.mxu0 %v4614_v44  ;;  %3773 = vmatprep.subr.mxu1 %v4207_v9 }
0x1714   :  { %3767 = vmatmul.mubr.f32.vlgmr.msra.gmra.mxu0 %v4207_v9  ;;  %3774 = vmatpush3.msra.mxu1 %v4604_v32 }
0x1715   :  { %3775 = vmatprep.subr.mxu1 %v4207_v9  ;;  %3777 = vmatprep.mubr.msk.f32.mxu1 %vm4208_vm5, %v4207_v9 }
0x1716   :  { %3776 = vmatpush3.msra.mxu1 %v4614_v44  ;;  %3780 = vmatprep.subr.mxu0 %v4207_v9 }
0x1717   :  { %3781 = vmatpush3.msra.mxu0 %v4584_v26  ;;  %3788 = vmatprep.mubr.msk.f32.mxu0 %vm4208_vm5, %v4207_v9 }
0x1718   :  { %3782 = vmatprep.subr.mxu0 %v4207_v9  ;;  %3791 = vmatprep.subr.mxu1 %v4207_v9 }
0x1719   :  { %3783 = vmatpush3.msra.mxu0 %v4596_v8 }
0x171a   :  { %3784 = vmatprep.subr.mxu0 %v4207_v9 }
0x171b   :  { %3785 = vmatpush3.msra.mxu0 %v4604_v32 }
0x171c   :  { %3786 = vmatprep.subr.mxu0 %v4207_v9 }
0x171d   :  { %3787 = vmatpush3.msra.mxu0 %v4614_v44 }
0x171e   :  { %3802 = vmatprep.subr.mxu0 %v4207_v9 }
0x17cb   :  { %v3740_v45 = vpop.f32.mrf.mxu0  ;;  %v3754_v46 = vpop.f32.mrf.mxu1 }
0x17cc   :  { %v4641_v47 = vadd.f32 %v3740_v45, %v3416_v49  ;;  %v1484_v1 = vcombine.high %v3754_v46, %v3754_v46 }
0x17cd   :  { %v1359_v48 = vpop.f32.mrf.mxu0  ;;  %v1460_v50 = vpop.f32.mrf.mxu1 }
0x17ce   :  { %v1360_v53 = vadd.f32 %v3416_v49, %v1359_v48  ;;  %v1483_v60 = vcombine.high %v1460_v50, %v1460_v50 }
0x17cf   :  { %v3757_v54 = vpop.f32.mrf.mxu1 }
0x17d0   :  { %v1382_v57 = vcombine.high %v1360_v53, %v1360_v53  ;;  %v3743_v58 = vpop.f32.mrf.mxu0  ;;  %v1486_v59 = vcombine.high %v3757_v54, %v3757_v54 }
0x17d1   :  { %v1375_v61 = vadd.f32 %v3743_v58, %v3416_v49  ;;  %v4669_v52 = vpop.f32.mrf.mxu1 }
0x17d2   :  { %v1591_v62 = vadd.f32 %v3757_v54, %v1382_v57  ;;  %v1369_v63 = vpop.f32.mrf.mxu0  ;;  %v1495_v0 = vadd.f32 %v1486_v59, %v1360_v53  ;;  %v1485_v45 = vcombine.high %v4669_v52, %v4669_v52 }
0x17d3   :  { %v1385_v56 = vcombine.high %v1375_v61, %v1375_v61  ;;  %v1370_v2 = vadd.f32 %v3416_v49, %v1369_v63  ;;  %v4643_v3 = vadd.f32 %v1483_v60, %v1375_v61 }
0x17d4   :  { %v1562_v4 = vpop.f32.mrf.mxu0 }
0x17d5   :  { %v1384_v36 = vcombine.high %v1370_v2, %v1370_v2  ;;  %v1566_v5 = vadd.f32 %v1562_v4, %v1495_v0  ;;  %v4645_v6 = vadd.f32 %v1484_v1, %v1370_v2  ;;  %v4647_v7 = vadd.f32 %v1460_v50, %v1385_v56 }
0x17d6   :  { %v3768_v11 = vpop.f32.mrf.mxu0 }
0x17d7   :  { %4007 = vtanh.f32 %v1566_v5  ;;  %v4649_v12 = vadd.f32 %v3754_v46, %v1384_v36  ;;  %v3425_v15 = vmul.f32 -1.442695, %v1566_v5  ;;  %v1692_v46 = vadd.f32 %v1485_v45, %v4641_v47 }
0x17d8   :  { %v1383_v5 = vcombine.high %v4641_v47, %v4641_v47 }
0x17d9   :  { %4009 = vpow2.f32 %v3425_v15 }
0x17da   :  { %v1793_v11 = vadd.f32 %v4669_v52, %v1383_v5 }
0x17e4   :  { %v4008_v14 = vpop.eup %4007 }
0x17e5   :  { %1576 = vrot.lane.b32.xlu0 %v4008_v14, %s4209_s4 }
0x17e6   :  { %v4010_v16 = vpop.eup %4009 }
0x17e7   :  { %v1570_v17 = vadd.f32 1.0, %v4010_v16 }
0x17e9   :  { %4011 = vrcp.f32 %v1570_v17 }
0x17f6   :  { %v4012_v18 = vpop.eup %4011 }
0x17f7   :  { %v1574_v51 = vmul.f32 0.0, %v4012_v18 }
0x1857   :  { %v1577_v19 = vpop.permute.xlu0 %1576 }
0x1858   :  { %v1579_v20 = vmul.f32 %v4012_v18, %v1577_v19 }
0x185a   :  { %1581 = vrot.lane.b32.xlu1 %v1579_v20, %s4210_s20 }
0x18cc   :  { %v1582_v21 = vpop.permute.xlu1 %1581 }
0x18cd   :  { %v1584_v22 = vadd.f32 %v1582_v21, %v1574_v51 }
0x18cf   :  { %4013 = vtanh.f32 %v1584_v22 }
0x18dc   :  { %v4014_v27 = vpop.eup %4013 }
0x18dd   :  { %1587 = vrot.lane.b32.xlu0 %v4014_v27, %s4209_s4 }
0x194f   :  { %v1588_v28 = vpop.permute.xlu0 %1587 }
0x1950   :  { %v1590_v29 = vmul.f32 %v4012_v18, %v1588_v28 }
0x1952   :  { %1593 = vrot.lane.b32.xlu1 %v1590_v29, %s4210_s20 }
0x19c4   :  { %v4655_v30 = vpop.permute.xlu1 %1593 }
0x19c5   :  { %3778 = vmatmul.mubr.msk.f32.vlgmr.msra.gmra.mxu1 %vm117_vm0, %v4655_v30 }
0x19c6   :  { %3792 = vmatpush3.msra.mxu1 %v4584_v26  ;;  %3799 = vmatprep.mubr.msk.f32.mxu1 %vm4208_vm5, %v4207_v9 }
0x19c7   :  { %3793 = vmatprep.subr.mxu1 %v4207_v9 }
0x19c8   :  { %3794 = vmatpush3.msra.mxu1 %v4596_v8 }
0x19c9   :  { %3795 = vmatprep.subr.mxu1 %v4207_v9 }
0x19ca   :  { %3796 = vmatpush3.msra.mxu1 %v4604_v32 }
0x19cb   :  { %3797 = vmatprep.subr.mxu1 %v4207_v9 }
0x19cc   :  { %3798 = vmatpush3.msra.mxu1 %v4614_v44 }
0x19cd   :  { %3813 = vmatprep.subr.mxu1 %v4207_v9 }
0x1a85   :  { %v1663_v31 = vpop.f32.mrf.mxu1 }
0x1a86   :  { %v1667_v33 = vadd.f32 %v1663_v31, %v1591_v62 }
0x1a87   :  { %v3779_v35 = vpop.f32.mrf.mxu1 }
0x1a88   :  { %4015 = vtanh.f32 %v1667_v33  ;;  %v3427_v38 = vmul.f32 -1.442695, %v1667_v33 }
0x1a8a   :  { %4017 = vpow2.f32 %v3427_v38 }
0x1a95   :  { %v4016_v37 = vpop.eup %4015 }
0x1a96   :  { %1677 = vrot.lane.b32.xlu0 %v4016_v37, %s4209_s4 }
0x1a97   :  { %v4018_v23 = vpop.eup %4017 }
0x1a98   :  { %v1671_v39 = vadd.f32 1.0, %v4018_v23 }
0x1a9a   :  { %4019 = vrcp.f32 %v1671_v39 }
0x1aa7   :  { %v4020_v40 = vpop.eup %4019 }
0x1aa8   :  { %v1675_v42 = vmul.f32 %v4020_v40, %v1584_v22 }
0x1b08   :  { %v1678_v24 = vpop.permute.xlu0 %1677 }
0x1b09   :  { %v1680_v41 = vmul.f32 %v4020_v40, %v1678_v24 }
0x1b0b   :  { %1682 = vrot.lane.b32.xlu1 %v1680_v41, %s4210_s20 }
0x1b7d   :  { %v1683_v25 = vpop.permute.xlu1 %1682 }
0x1b7e   :  { %v1685_v43 = vadd.f32 %v1683_v25, %v1675_v42 }
0x1b80   :  { %4021 = vtanh.f32 %v1685_v43 }
0x1b8d   :  { %v4022_v55 = vpop.eup %4021 }
0x1b8e   :  { %1688 = vrot.lane.b32.xlu0 %v4022_v55, %s4209_s4 }
0x1c00   :  { %v1689_v13 = vpop.permute.xlu0 %1688 }
0x1c01   :  { %v1691_v34 = vmul.f32 %v4020_v40, %v1689_v13 }
0x1c03   :  { %1694 = vrot.lane.b32.xlu1 %v1691_v34, %s4210_s20 }
0x1c75   :  { %v4675_v49 = vpop.permute.xlu1 %1694 }
0x1c76   :  { %3789 = vmatmul.mubr.msk.f32.vlgmr.msra.gmra.mxu0 %vm117_vm0, %v4675_v49 }
0x1c77   :  { %3803 = vmatpush3.msra.mxu0 %v4584_v26  ;;  %3810 = vmatprep.mubr.msk.f32.mxu0 %vm4208_vm5, %v4207_v9 }
0x1c78   :  { %3804 = vmatprep.subr.mxu0 %v4207_v9 }
0x1c79   :  { %3805 = vmatpush3.msra.mxu0 %v4596_v8 }
0x1c7a   :  { %3806 = vmatprep.subr.mxu0 %v4207_v9 }
0x1c7b   :  { %3807 = vmatpush3.msra.mxu0 %v4604_v32 }
0x1c7c   :  { %3808 = vmatprep.subr.mxu0 %v4207_v9 }
0x1c7d   :  { %3809 = vmatpush3.msra.mxu0 %v4614_v44 }
0x1c7e   :  { %3824 = vmatprep.subr.mxu0 %v4207_v9 }
0x1d36   :  { %v1764_v48 = vpop.f32.mrf.mxu0 }
0x1d37   :  { %v1768_v50 = vadd.f32 %v1764_v48, %v1692_v46 }
0x1d38   :  { %v3790_v53 = vpop.f32.mrf.mxu0 }
0x1d39   :  { %4023 = vtanh.f32 %v1768_v50  ;;  %v3429_v57 = vmul.f32 -1.442695, %v1768_v50 }
0x1d3b   :  { %4025 = vpow2.f32 %v3429_v57 }
0x1d46   :  { %v4024_v54 = vpop.eup %4023 }
0x1d47   :  { %1778 = vrot.lane.b32.xlu0 %v4024_v54, %s4209_s4 }
0x1d48   :  { %v4026_v58 = vpop.eup %4025 }
0x1d49   :  { %v1772_v59 = vadd.f32 1.0, %v4026_v58 }
0x1d4b   :  { %4027 = vrcp.f32 %v1772_v59 }
0x1d58   :  { %v4028_v60 = vpop.eup %4027 }
0x1d59   :  { %v1776_v63 = vmul.f32 %v4028_v60, %v1685_v43 }
0x1db9   :  { %v1779_v61 = vpop.permute.xlu0 %1778 }
0x1dba   :  { %v1781_v62 = vmul.f32 %v4028_v60, %v1779_v61 }
0x1dbc   :  { %1783 = vrot.lane.b32.xlu1 %v1781_v62, %s4210_s20 }
0x1e2e   :  { %v1784_v0 = vpop.permute.xlu1 %1783 }
0x1e2f   :  { %v1786_v1 = vadd.f32 %v1784_v0, %v1776_v63 }
0x1e31   :  { %4029 = vtanh.f32 %v1786_v1 }
0x1e3e   :  { %v4030_v56 = vpop.eup %4029 }
0x1e3f   :  { %1789 = vrot.lane.b32.xlu0 %v4030_v56, %s4209_s4 }
0x1eb1   :  { %v1790_v2 = vpop.permute.xlu0 %1789 }
0x1eb2   :  { %v1792_v4 = vmul.f32 %v4028_v60, %v1790_v2 }
0x1eb4   :  { %1795 = vrot.lane.b32.xlu1 %v1792_v4, %s4210_s20 }
0x1f26   :  { %v4696_v36 = vpop.permute.xlu1 %1795 }
0x1f27   :  { %3800 = vmatmul.mubr.msk.f32.vlgmr.msra.gmra.mxu1 %vm117_vm0, %v4696_v36 }
0x1f28   :  { %3814 = vmatpush3.msra.mxu1 %v4584_v26  ;;  %3821 = vmatprep.mubr.msk.f32.mxu1 %vm4208_vm5, %v4207_v9 }
0x1f29   :  { %3815 = vmatprep.subr.mxu1 %v4207_v9 }
0x1f2a   :  { %3816 = vmatpush3.msra.mxu1 %v4596_v8 }
0x1f2b   :  { %3817 = vmatprep.subr.mxu1 %v4207_v9 }
0x1f2c   :  { %3818 = vmatpush3.msra.mxu1 %v4604_v32 }
0x1f2d   :  { %3819 = vmatprep.subr.mxu1 %v4207_v9 }
0x1f2e   :  { %3820 = vmatpush3.msra.mxu1 %v4614_v44 }
0x1f2f   :  { %3835 = vmatprep.subr.mxu1 %v4207_v9 }
0x1fe7   :  { %v1865_v14 = vpop.f32.mrf.mxu1 }
0x1fe8   :  { %v1869_v15 = vadd.f32 %v1865_v14, %v1793_v11 }
0x1fe9   :  { %v3801_v16 = vpop.f32.mrf.mxu1 }
0x1fea   :  { %4031 = vtanh.f32 %v1869_v15  ;;  %v3431_v18 = vmul.f32 -1.442695, %v1869_v15 }
0x1fec   :  { %4033 = vpow2.f32 %v3431_v18 }
0x1ff7   :  { %v4032_v17 = vpop.eup %4031 }
0x1ff8   :  { %1879 = vrot.lane.b32.xlu0 %v4032_v17, %s4209_s4 }
0x1ff9   :  { %v4034_v19 = vpop.eup %4033 }
0x1ffa   :  { %v1873_v20 = vadd.f32 1.0, %v4034_v19 }
0x1ffc   :  { %4035 = vrcp.f32 %v1873_v20 }
0x2009   :  { %v4036_v51 = vpop.eup %4035 }
0x200a   :  { %v1877_v47 = vmul.f32 %v4036_v51, %v1786_v1 }
0x206a   :  { %v1880_v21 = vpop.permute.xlu0 %1879 }
0x206b   :  { %v1882_v22 = vmul.f32 %v4036_v51, %v1880_v21 }
0x206d   :  { %1884 = vrot.lane.b32.xlu1 %v1882_v22, %s4210_s20 }
0x20df   :  { %v1885_v27 = vpop.permute.xlu1 %1884 }
0x20e0   :  { %v1887_v28 = vadd.f32 %v1885_v27, %v1877_v47 }
0x20e2   :  { %4037 = vtanh.f32 %v1887_v28 }
0x20ef   :  { %v4038_v29 = vpop.eup %4037 }
0x20f0   :  { %1890 = vrot.lane.b32.xlu0 %v4038_v29, %s4209_s4 }
0x2162   :  { %v1891_v52 = vpop.permute.xlu0 %1890 }
0x2163   :  { %v1893_v31 = vmul.f32 %v4036_v51, %v1891_v52 }
0x2165   :  { %1896 = vrot.lane.b32.xlu1 %v1893_v31, %s4210_s20 }
0x21d7   :  { %v4717_v33 = vpop.permute.xlu1 %1896 }
0x21d8   :  { %3811 = vmatmul.mubr.msk.f32.vlgmr.msra.gmra.mxu0 %vm117_vm0, %v4717_v33 }
0x21d9   :  { %3825 = vmatpush3.msra.mxu0 %v4584_v26  ;;  %3832 = vmatprep.mubr.msk.f32.mxu0 %vm4208_vm5, %v4207_v9 }
0x21da   :  { %3826 = vmatprep.subr.mxu0 %v4207_v9 }
0x21db   :  { %3827 = vmatpush3.msra.mxu0 %v4596_v8 }
0x21dc   :  { %3828 = vmatprep.subr.mxu0 %v4207_v9 }
0x21dd   :  { %3829 = vmatpush3.msra.mxu0 %v4604_v32 }
0x21de   :  { %3830 = vmatprep.subr.mxu0 %v4207_v9 }
0x21df   :  { %3831 = vmatpush3.msra.mxu0 %v4614_v44 }
0x21e0   :  { %3846 = vmatprep.subr.mxu0 %v4207_v9 }
0x2298   :  { %v1966_v35 = vpop.f32.mrf.mxu0 }
0x2299   :  { %v1970_v37 = vadd.f32 %v1966_v35, %v4645_v6 }
0x229a   :  { %v3812_v38 = vpop.f32.mrf.mxu0 }
0x229b   :  { %4039 = vtanh.f32 %v1970_v37  ;;  %v3433_v39 = vmul.f32 -1.442695, %v1970_v37 }
0x229d   :  { %4041 = vpow2.f32 %v3433_v39 }
0x22a8   :  { %v4040_v23 = vpop.eup %4039 }
0x22a9   :  { %1980 = vrot.lane.b32.xlu0 %v4040_v23, %s4209_s4 }
0x22aa   :  { %v4042_v40 = vpop.eup %4041 }
0x22ab   :  { %v1974_v24 = vadd.f32 1.0, %v4042_v40 }
0x22ad   :  { %4043 = vrcp.f32 %v1974_v24 }
0x22ba   :  { %v4044_v41 = vpop.eup %4043 }
0x22bb   :  { %v1978_v43 = vmul.f32 %v4044_v41, %v1887_v28 }
0x231b   :  { %v1981_v42 = vpop.permute.xlu0 %1980 }
0x231c   :  { %v1983_v25 = vmul.f32 %v4044_v41, %v1981_v42  ;;  %v4783_v42 = vld [vmem:[%s5009_s11 + $0x10] sm:$0xff] }
0x231e   :  { %1985 = vrot.lane.b32.xlu1 %v1983_v25, %s4210_s20  ;;  %v4790_v25 = vld [vmem:[%s5009_s11 + $0x8] sm:$0xff] }
0x2390   :  { %v1986_v55 = vpop.permute.xlu1 %1985 }
0x2391   :  { %v1988_v13 = vadd.f32 %v1986_v55, %v1978_v43  ;;  %v4795_v43 = vld [vmem:[%s5009_s11] sm:$0xff] }
0x2393   :  { %4045 = vtanh.f32 %v1988_v13 }
0x23a0   :  { %v4046_v6 = vpop.eup %4045 }
0x23a1   :  { %1991 = vrot.lane.b32.xlu0 %v4046_v6, %s4209_s4 }
0x2413   :  { %v1992_v34 = vpop.permute.xlu0 %1991 }
0x2414   :  { %v1994_v45 = vmul.f32 %v4044_v41, %v1992_v34  ;;  %v4776_v41 = vld [vmem:[%s5009_s11 + $0x18] sm:$0xff] }
0x2416   :  { %1997 = vrot.lane.b32.xlu1 %v1994_v45, %s4210_s20 }
0x2488   :  { %v4736_v46 = vpop.permute.xlu1 %1997 }
0x2489   :  { %3822 = vmatmul.mubr.msk.f32.vlgmr.msra.gmra.mxu1 %vm117_vm0, %v4736_v46  ;;  %v2312_v6 = vsel %vm224_vm6, %v4717_v33, %v4736_v46  ;;  %v4808_v34 = vsel %vm224_vm6, %v4736_v46, %v4717_v33 }
0x248a   :  { %3836 = vmatpush3.msra.mxu1 %v4584_v26  ;;  %3843 = vmatprep.mubr.msk.f32.mxu1 %vm4208_vm5, %v4207_v9  ;;  %v2847_v46 = vrot.slane %v2312_v6, 7 }
0x248b   :  { %3837 = vmatprep.subr.mxu1 %v4207_v9 }
0x248c   :  { %3838 = vmatpush3.msra.mxu1 %v4596_v8 }
0x248d   :  { %3839 = vmatprep.subr.mxu1 %v4207_v9 }
0x248e   :  { %3840 = vmatpush3.msra.mxu1 %v4604_v32 }
0x248f   :  { %3841 = vmatprep.subr.mxu1 %v4207_v9 }
0x2490   :  { %3842 = vmatpush3.msra.mxu1 %v4614_v44 }
0x2491   :  { %3857 = vmatprep.subr.mxu1 %v4207_v9 }
0x2549   :  { %v2067_v48 = vpop.f32.mrf.mxu1 }
0x254a   :  { %v2071_v26 = vadd.f32 %v2067_v48, %v4649_v12  ;;  %v2337_v48 = vrot.slane %v2312_v6, 5 }
0x254b   :  { %v3823_v50 = vpop.f32.mrf.mxu1 }
0x254c   :  { %4047 = vtanh.f32 %v2071_v26  ;;  %v3435_v54 = vmul.f32 -1.442695, %v2071_v26  ;;  %v2340_v26 = vrot.slane %v4808_v34, 4 }
0x254e   :  { %4049 = vpow2.f32 %v3435_v54  ;;  %v2600_v54 = vrot.slane %v4808_v34, 5 }
0x2559   :  { %v4048_v53 = vpop.eup %4047 }
0x255a   :  { %2081 = vrot.lane.b32.xlu0 %v4048_v53, %s4209_s4  ;;  %v2598_v53 = vrot.slane %v2312_v6, 6 }
0x255b   :  { %v4050_v8 = vpop.eup %4049 }
0x255c   :  { %v2075_v57 = vadd.f32 1.0, %v4050_v8 }
0x255e   :  { %4051 = vrcp.f32 %v2075_v57  ;;  %v2849_v57 = vrot.slane %v4808_v34, 6 }
0x256b   :  { %v4052_v32 = vpop.eup %4051 }
0x256c   :  { %v2079_v44 = vmul.f32 %v4052_v32, %v1988_v13 }
0x25cc   :  { %v2082_v58 = vpop.permute.xlu0 %2081 }
0x25cd   :  { %v2084_v59 = vmul.f32 %v4052_v32, %v2082_v58 }
0x25cf   :  { %2086 = vrot.lane.b32.xlu1 %v2084_v59, %s4210_s20 }
0x2641   :  { %v2087_v60 = vpop.permute.xlu1 %2086 }
0x2642   :  { %v2089_v61 = vadd.f32 %v2087_v60, %v2079_v44 }
0x2644   :  { %4053 = vtanh.f32 %v2089_v61 }
0x2651   :  { %v4054_v12 = vpop.eup %4053 }
0x2652   :  { %2092 = vrot.lane.b32.xlu0 %v4054_v12, %s4209_s4 }
0x26c4   :  { %v2093_v62 = vpop.permute.xlu0 %2092 }
0x26c5   :  { %v2095_v63 = vmul.f32 %v4052_v32, %v2093_v62  ;;  %v3098_v32 = vrot.slane %v4808_v34, 7 }
0x26c7   :  { %2098 = vrot.lane.b32.xlu1 %v2095_v63, %s4210_s20 }
0x2739   :  { %v4755_v0 = vpop.permute.xlu1 %2098 }
0x273a   :  { %3833 = vmatmul.mubr.msk.f32.vlgmr.msra.gmra.mxu0 %vm117_vm0, %v4755_v0  ;;  %v2311_v45 = vsel %vm224_vm6, %v4696_v36, %v4755_v0  ;;  %v4817_v50 = vsel %vm224_vm6, %v4755_v0, %v4696_v36 }
0x273b   :  { %3854 = vmatprep.mubr.msk.f32.mxu0 %vm4208_vm5, %v4207_v9  ;;  %3847 = vmatpush3.msra.mxu0 %v4776_v41  ;;  %v2334_v58 = vrot.slane %v2311_v45, 6  ;;  %v2343_v59 = vrot.slane %v4817_v50, 3  ;;  %v2596_v36 = vrot.slane %v2311_v45, 7  ;;  %v2602_v44 = vrot.slane %v4817_v50, 4 }
0x273c   :  { %3848 = vmatprep.subr.mxu0 %v4207_v9  ;;  %v2851_v60 = vrot.slane %v4817_v50, 5  ;;  %v3100_v12 = vrot.slane %v4817_v50, 6 }
0x273d   :  { %3849 = vmatpush3.msra.mxu0 %v4783_v42 }
0x273e   :  { %3850 = vmatprep.subr.mxu0 %v4207_v9 }
0x273f   :  { %3851 = vmatpush3.msra.mxu0 %v4790_v25 }
0x2740   :  { %3852 = vmatprep.subr.mxu0 %v4207_v9 }
0x2741   :  { %3853 = vmatpush3.msra.mxu0 %v4795_v43 }
0x2742   :  { %3862 = vmatprep.subr.mxu0 %v4207_v9 }
0x27fa   :  { %v2168_v1 = vpop.f32.mrf.mxu0 }
0x27fb   :  { %v2172_v56 = vadd.f32 %v2168_v1, %v4643_v3 }
0x27fc   :  { %v3834_v2 = vpop.f32.mrf.mxu0 }
0x27fd   :  { %4055 = vtanh.f32 %v2172_v56  ;;  %v3437_v5 = vmul.f32 -1.442695, %v2172_v56 }
0x27ff   :  { %4057 = vpow2.f32 %v3437_v5 }
0x280a   :  { %v4056_v4 = vpop.eup %4055 }
0x280b   :  { %2182 = vrot.lane.b32.xlu0 %v4056_v4, %s4209_s4 }
0x280c   :  { %v4058_v11 = vpop.eup %4057 }
0x280d   :  { %v2176_v14 = vadd.f32 1.0, %v4058_v11 }
0x280f   :  { %4059 = vrcp.f32 %v2176_v14 }
0x281c   :  { %v4060_v15 = vpop.eup %4059 }
0x281d   :  { %v2180_v18 = vmul.f32 %v4060_v15, %v2089_v61  ;;  %v3095_v61 = vrot.slane %v2311_v45, 1 }
0x287d   :  { %v2183_v16 = vpop.permute.xlu0 %2182 }
0x287e   :  { %v2185_v17 = vmul.f32 %v4060_v15, %v2183_v16 }
0x2880   :  { %2187 = vrot.lane.b32.xlu1 %v2185_v17, %s4210_s20 }
0x28f2   :  { %v2188_v19 = vpop.permute.xlu1 %2187 }
0x28f3   :  { %v2190_v20 = vadd.f32 %v2188_v19, %v2180_v18 }
0x28f5   :  { %4061 = vtanh.f32 %v2190_v20 }
0x2902   :  { %v4062_v3 = vpop.eup %4061 }
0x2903   :  { %2193 = vrot.lane.b32.xlu0 %v4062_v3, %s4209_s4 }
0x2975   :  { %v2194_v51 = vpop.permute.xlu0 %2193 }
0x2976   :  { %v2196_v21 = vmul.f32 %v4060_v15, %v2194_v51 }
0x2978   :  { %2199 = vrot.lane.b32.xlu1 %v2196_v21, %s4210_s20 }
0x29ea   :  { %v2200_v22 = vpop.permute.xlu1 %2199 }
0x29eb   :  { %3844 = vmatmul.mubr.msk.f32.vlgmr.msra.gmra.mxu1 %vm117_vm0, %v2200_v22  ;;  %v2310_v8 = vsel %vm224_vm6, %v4675_v49, %v2200_v22  ;;  %v4824_v33 = vsel %vm224_vm6, %v2200_v22, %v4675_v49 }
0x29ec   :  { %3859 = vmatprep.mubr.msk.f32.mxu1 %vm4208_vm5, %v4207_v9  ;;  %v2331_v62 = vrot.slane %v2310_v8, 7  ;;  %v2346_v49 = vrot.slane %v4824_v33, 2  ;;  %v2604_v63 = vrot.slane %v4824_v33, 3  ;;  %v2844_v0 = vrot.slane %v2310_v8, 1 }
0x29ed   :  { %v2853_v1 = vrot.slane %v4824_v33, 4  ;;  %v3093_v56 = vrot.slane %v2310_v8, 2  ;;  %v3102_v2 = vrot.slane %v4824_v33, 5 }
0x2aab   :  { %v2269_v47 = vpop.f32.mrf.mxu1 }
0x2aac   :  { %v2273_v27 = vadd.f32 %v2269_v47, %v4647_v7 }
0x2aad   :  { %v3845_v28 = vpop.f32.mrf.mxu1 }
0x2aae   :  { %4063 = vtanh.f32 %v2273_v27  ;;  %v3439_v52 = vmul.f32 -1.442695, %v2273_v27 }
0x2ab0   :  { %4065 = vpow2.f32 %v3439_v52 }
0x2abb   :  { %v4064_v29 = vpop.eup %4063 }
0x2abc   :  { %2283 = vrot.lane.b32.xlu0 %v4064_v29, %s4209_s4 }
0x2abd   :  { %v4066_v31 = vpop.eup %4065 }
0x2abe   :  { %v2277_v35 = vadd.f32 1.0, %v4066_v31 }
0x2ac0   :  { %4067 = vrcp.f32 %v2277_v35 }
0x2acd   :  { %v4068_v37 = vpop.eup %4067 }
0x2ace   :  { %v2281_v39 = vmul.f32 %v4068_v37, %v2190_v20 }
0x2b2e   :  { %v2284_v38 = vpop.permute.xlu0 %2283 }
0x2b2f   :  { %v2286_v23 = vmul.f32 %v4068_v37, %v2284_v38 }
0x2b31   :  { %2288 = vrot.lane.b32.xlu1 %v2286_v23, %s4210_s20 }
0x2ba3   :  { %v2289_v40 = vpop.permute.xlu1 %2288 }
0x2ba4   :  { %v2291_v24 = vadd.f32 %v2289_v40, %v2281_v39 }
0x2ba6   :  { %4069 = vtanh.f32 %v2291_v24 }
0x2bb3   :  { %v4070_v7 = vpop.eup %4069 }
0x2bb4   :  { %2294 = vrot.lane.b32.xlu0 %v4070_v7, %s4209_s4 }
0x2c26   :  { %v2295_v55 = vpop.permute.xlu0 %2294 }
0x2c27   :  { %v2297_v13 = vmul.f32 %v4068_v37, %v2295_v55 }
0x2c29   :  { %2299 = vrot.lane.b32.xlu1 %v2297_v13, %s4210_s20 }
0x2c9b   :  { %v2300_v4 = vpop.permute.xlu1 %2299 }
0x2c9c   :  { %v2309_v5 = vsel %vm224_vm6, %v4655_v30, %v2300_v4  ;;  %v2316_v11 = vsel %vm224_vm6, %v2300_v4, %v4655_v30 }
0x2c9d   :  { %v2333_v14 = vsel %vm2332_vm7, %v2331_v62, %v2309_v5  ;;  %v2594_v15 = vrot.slane %v2309_v5, 1  ;;  %v2349_v17 = vrot.slane %v2316_v11, 1  ;;  %v2843_v18 = vrot.slane %v2309_v5, 2 }
0x2c9e   :  { %v2336_v16 = vsel %vm2335_vm8, %v2334_v58, %v2333_v14  ;;  %v3092_v19 = vrot.slane %v2309_v5, 3  ;;  %v2606_v51 = vrot.slane %v2316_v11, 2  ;;  %v2855_v21 = vrot.slane %v2316_v11, 3 }
0x2c9f   :  { %v2339_v20 = vsel %vm2338_vm9, %v2337_v48, %v2336_v16  ;;  %v2595_v3 = vsel %vm2332_vm7, %v2310_v8, %v2594_v15  ;;  %v2845_v22 = vsel %vm2332_vm7, %v2844_v0, %v2843_v18  ;;  %v3104_v55 = vrot.slane %v2316_v11, 4 }
0x2ca0   :  { %v2597_v30 = vsel %vm2335_vm8, %v2596_v36, %v2595_v3  ;;  %v3094_v47 = vsel %vm2332_vm7, %v3093_v56, %v3092_v19  ;;  %v2342_v27 = vsel %vm2341_vm10, %v2340_v26, %v2339_v20  ;;  %v2846_v28 = vsel %vm2335_vm8, %v2311_v45, %v2845_v22 }
0x2ca1   :  { %v3096_v29 = vsel %vm2335_vm8, %v3095_v61, %v3094_v47  ;;  %v2345_v52 = vsel %vm2344_vm11, %v2343_v59, %v2342_v27  ;;  %v2599_v31 = vsel %vm2338_vm9, %v2598_v53, %v2597_v30  ;;  %v2848_v38 = vsel %vm2338_vm9, %v2847_v46, %v2846_v28  ;;  %v4879_v46 = vld [vmem:[#allocation7] sm:$0xf] }
0x2ca2   :  { %v2348_v35 = vsel %vm2347_vm12, %v2346_v49, %v2345_v52  ;;  %v2601_v37 = vsel %vm2341_vm10, %v2600_v54, %v2599_v31  ;;  %v3097_v23 = vsel %vm2338_vm9, %v2312_v6, %v3096_v29  ;;  %v2850_v24 = vsel %vm2341_vm10, %v2849_v57, %v2848_v38 }
0x2ca3   :  { %v2351_v39 = vsel %vm2350_vm13, %v2349_v17, %v2348_v35  ;;  %v2603_v40 = vsel %vm2344_vm11, %v2602_v44, %v2601_v37  ;;  %v3099_v7 = vsel %vm2341_vm10, %v3098_v32, %v3097_v23  ;;  %v2852_v34 = vsel %vm2344_vm11, %v2851_v60, %v2850_v24 }
0x2ca4   :  { %3855 = vmatmul.mubr.msk.f32.vlgmr.msra.gmra.mxu0 %vm117_vm0, %v2351_v39  ;;  %v2605_v13 = vsel %vm2347_vm12, %v2604_v63, %v2603_v40  ;;  %v3101_v45 = vsel %vm2344_vm11, %v3100_v12, %v3099_v7  ;;  %v2854_v48 = vsel %vm2347_vm12, %v2853_v1, %v2852_v34  ;;  %v4923_v57 = vshrl.u32 %v87_v10, 7 }
0x2ca5   :  { %3863 = vmatpush3.msra.mxu0 %v2351_v39  ;;  %v4865_v6 = vsel %vm2350_vm13, %v2606_v51, %v2605_v13  ;;  %v3103_v26 = vsel %vm2347_vm12, %v3102_v2, %v3101_v45  ;;  %3864 = vmatprep.mubr.msk.f32.mxu0 %vm4208_vm5, %v4207_v9  ;;  %v4872_v50 = vsel %vm2350_vm13, %v2855_v21, %v2854_v48 }
0x2ca6   :  { %v4875_v53 = vsel %vm2350_vm13, %v3104_v55, %v3103_v26  ;;  %3878 = vmatprep.subr.mxu0 %v4207_v9  ;;  %v2683_v14 = vsub.s32 1, %v4923_v57  ;;  %v2932_v31 = vsub.s32 2, %v4923_v57 }
0x2d64   :  { %v2420_v54 = vpop.f32.mrf.mxu0 }
0x2d65   :  { %4071 = vtanh.f32 %v2420_v54  ;;  %v3181_v54 = vsub.s32 3, %v4923_v57 }
0x2d66   :  { %v3856_v8 = vpop.f32.mrf.mxu0 }
0x2d72   :  { %v4072_v33 = vpop.eup %4071 }
0x2d73   :  { %3858 = vmatpush3.xpose.msk.msra.mxu1 %vm224_vm6, %v4072_v33 }
0x2d74   :  { %3867 = vmatprep.subr.mxu1 %v4207_v9 }
0x2d76   :  { %3860 = vmatmul.mubr.msk.f32.vlgmr.msra.gmra.mxu1 %vm224_vm6, %v4879_v46 }
0x2d77   :  { %3868 = vmatpush3.msra.mxu1 %v4776_v41  ;;  %3875 = vmatprep.mubr.msk.f32.mxu1 %vm4208_vm5, %v4207_v9 }
0x2d78   :  { %3869 = vmatprep.subr.mxu1 %v4207_v9 }
0x2d79   :  { %3870 = vmatpush3.msra.mxu1 %v4783_v42 }
0x2d7a   :  { %3871 = vmatprep.subr.mxu1 %v4207_v9 }
0x2d7b   :  { %3872 = vmatpush3.msra.mxu1 %v4790_v25 }
0x2d7c   :  { %3873 = vmatprep.subr.mxu1 %v4207_v9 }
0x2d7d   :  { %3874 = vmatpush3.msra.mxu1 %v4795_v43 }
0x2d7e   :  { %3876 = vmatmul.mubr.msk.f32.vlgmr.msra.gmra.mxu1 %vm117_vm0, %v4865_v6  ;;  %3888 = vmatprep.subr.mxu1 %v4207_v9 }
0x2d7f   :  { %3889 = vmatpush3.msra.mxu1 %v4776_v41  ;;  %3896 = vmatprep.mubr.msk.f32.mxu1 %vm4208_vm5, %v4207_v9 }
0x2d80   :  { %3890 = vmatprep.subr.mxu1 %v4207_v9 }
0x2d81   :  { %3891 = vmatpush3.msra.mxu1 %v4783_v42 }
0x2d82   :  { %3892 = vmatprep.subr.mxu1 %v4207_v9 }
0x2d83   :  { %3893 = vmatpush3.msra.mxu1 %v4790_v25 }
0x2d84   :  { %3894 = vmatprep.subr.mxu1 %v4207_v9 }
0x2d85   :  { %3895 = vmatpush3.msra.mxu1 %v4795_v43 }
0x2d86   :  { %3897 = vmatmul.mubr.msk.f32.vlgmr.msra.gmra.mxu1 %vm117_vm0, %v4872_v50  ;;  %3909 = vmatprep.subr.mxu1 %v4207_v9 }
0x2d87   :  { %3910 = vmatpush3.msra.mxu1 %v4776_v41  ;;  %3917 = vmatprep.mubr.msk.f32.mxu1 %vm4208_vm5, %v4207_v9  ;;  %v2322_v41 = vld [vmem:[%s4999_s1] sm:$0xf]  ;;  %s4211_s1 = smov [#allocation9]  }
0x2d88   :  { %3911 = vmatprep.subr.mxu1 %v4207_v9  ;;  %vm2425_vm14 = vcmp.eq.s32.totalorder %v2322_v41, 0  ;;  %s3367_s2 = sshll.u32 %s4211_s1, 4  ;;  %s3368_s2 = int_to_ptr.vmem [resolvable:$true] %s3367_s2 }
0x2d89   :  { %3912 = vmatpush3.msra.mxu1 %v4783_v42  ;;  %v2429_v42 = vsub.s32 0, %v4923_v57  ;;  %v4927_v32 = vsel %vm2425_vm14, -10000.0, %v4207_v9  ;;  %s4155_s27 = scalar_lea.vmem %s3368_s2, 256  ;;  %p4160_p2 = scmp.lt.s32.totalorder %s3368_s2, %s3368_s2 }
0x2d8a   :  { %3913 = vmatprep.subr.mxu1 %v4207_v9  ;;  %v2684_v16 = vrot.slane %v4927_v32, %v2683_v14  ;;  %v2933_v37 = vrot.slane %v4927_v32, %v2932_v31  ;;  %v3182_v33 = vrot.slane %v4927_v32, %v3181_v54  ;;  %p4156_p1 = scmp.ne.s32.totalorder %s3368_s2, %s4155_s27  ;;  %p4161_p3 = scmp.lt.s32.totalorder %s4155_s27, %s4155_s27 }
0x2d8b   :  { %3914 = vmatpush3.msra.mxu1 %v4790_v25  ;;  %v2430_v25 = vrot.slane %v4927_v32, %v2429_v42 }
0x2d8c   :  { %3915 = vmatprep.subr.mxu1 %v4207_v9  ;;  %p4162_p4 = por %p4161_p3, %p4160_p2 }
0x2d8d   :  { %3916 = vmatpush3.msra.mxu1 %v4795_v43 }
0x2d8e   :  { %3918 = vmatmul.mubr.msk.f32.vlgmr.msra.gmra.mxu1 %vm117_vm0, %v4875_v53  ;;  %vm2520_vm0 = vcmask 64512   ;;  %p4163_p5 = pnand %p4162_p4, %p4156_p1 }
0x2e36   :  { %v2503_v58 = vpop.f32.mrf.mxu1 }
0x2e37   :  { %v2504_v43 = vadd.f32 %v2503_v58, %v2430_v25 }
0x2e38   :  { %v3861_v59 = vpop.f32.mrf.mxu1 }
0x2e39   :  { %v2508_v36 = vsel %vm2507_vm15, %v2504_v43, -inf }
0x2e3a   :  { %2509 = vmax.xlane.f32.xlu0 %v2508_v36 }
0x2e3e   :  { %v2676_v44 = vpop.f32.mrf.mxu1 }
0x2e40   :  { %v3877_v60 = vpop.f32.mrf.mxu1 }
0x2e46   :  { %v2925_v61 = vpop.f32.mrf.mxu1 }
0x2e48   :  { %v3898_v10 = vpop.f32.mrf.mxu1 }
0x2e4e   :  { %v4931_v12 = vpop.f32.mrf.mxu1 }
0x2e50   :  { %v3919_v62 = vpop.f32.mrf.mxu1 }
0x2ec3   :  { %v2510_v49 = vpop.xlane.xlu0 %2509 }
0x2ec4   :  { %v2511_v63 = vsub.f32 %v2504_v43, %v2510_v49 }
0x2ec6   :  { %v2512_v0 = vmul.f32 1.442695, %v2511_v63 }
0x2ec8   :  { %4073 = vpow2.f32 %v2512_v0 }
0x2ed5   :  { %v4074_v1 = vpop.eup %4073 }
0x2ed6   :  { %v2514_v56 = vsel %vm2507_vm15, %v4074_v1, 0.0 }
0x2ed7   :  { %2515 = vadd.xlane.f32.xlu1 %v2514_v56 }
0x2f60   :  { %v2516_v2 = vpop.xlane.xlu1 %2515 }
0x2f61   :  { %4075 = vrcp.f32 %v2516_v2 }
0x2f62   :  { %4077 = vtanh.f32 %v2676_v44 }
0x2f6e   :  { %v4076_v4 = vpop.eup %4075 }
0x2f6f   :  { %v2518_v5 = vmul.f32 %v4076_v4, %v4074_v1  ;;  %v4078_v11 = vpop.eup %4077 }
0x2f71   :  { %3865 = vmatmul.mubr.msk.f32.vlgmr.msra.gmra.mxu0 %vm2520_vm0, %v2518_v5  ;;  %3346 = vst.msk [vmem:[#allocation9] sm:$0xf] %vm2507_vm15, %v2518_v5 }
0x2f72   :  { %3879 = vmatpush3.xpose.msk.msra.mxu0 %vm224_vm6, %v4078_v11  ;;  %3880 = vmatprep.mubr.msk.f32.mxu0 %vm4208_vm5, %v4207_v9 }
0x2f73   :  { %3883 = vmatprep.subr.mxu0 %v4207_v9 }
0x2f75   :  { %3881 = vmatmul.mubr.msk.f32.vlgmr.msra.gmra.mxu0 %vm224_vm6, %v4879_v46 }
0x2f76   :  { %3884 = vmatpush3.msra.mxu0 %v4865_v6  ;;  %3885 = vmatprep.mubr.msk.f32.mxu0 %vm4208_vm5, %v4207_v9 }
0x2f77   :  { %3899 = vmatprep.subr.mxu0 %v4207_v9 }
0x3031   :  { %v2590_v15 = vpop.f32.mrf.mxu0 }
0x3032   :  { %3342 = vst.msk [vmem:[#allocation8] sm:$0xf] %vm3341_vm1, %v2590_v15 }
0x3033   :  { %v3866_v17 = vpop.f32.mrf.mxu0 }
0x3035   :  { %v2754_v18 = vpop.f32.mrf.mxu0 }
0x3036   :  { %v2755_v19 = vadd.f32 %v2754_v18, %v2684_v16 }
0x3037   :  { %v3882_v20 = vpop.f32.mrf.mxu0 }
0x3038   :  { %v2758_v3 = vsel %vm2507_vm15, %v2755_v19, -inf }
0x3039   :  { %2759 = vmax.xlane.f32.xlu0 %v2758_v3 }
0x30c2   :  { %v2760_v51 = vpop.xlane.xlu0 %2759 }
0x30c3   :  { %v2761_v21 = vsub.f32 %v2755_v19, %v2760_v51 }
0x30c5   :  { %v2762_v30 = vmul.f32 1.442695, %v2761_v21 }
0x30c7   :  { %4079 = vpow2.f32 %v2762_v30 }
0x30d4   :  { %v4080_v22 = vpop.eup %4079 }
0x30d5   :  { %v2764_v47 = vsel %vm2507_vm15, %v4080_v22, 0.0 }
0x30d6   :  { %2765 = vadd.xlane.f32.xlu0 %v2764_v47 }
0x315f   :  { %v2766_v27 = vpop.xlane.xlu0 %2765 }
0x3160   :  { %4081 = vrcp.f32 %v2766_v27 }
0x3161   :  { %4083 = vtanh.f32 %v2925_v61 }
0x316d   :  { %v4082_v28 = vpop.eup %4081 }
0x316e   :  { %v2768_v29 = vmul.f32 %v4082_v28, %v4080_v22  ;;  %v4084_v52 = vpop.eup %4083 }
0x3170   :  { %3886 = vmatmul.mubr.msk.f32.vlgmr.msra.gmra.mxu0 %vm2520_vm0, %v2768_v29  ;;  %3347 = vst.msk [vmem:[#allocation9 + $0x4] sm:$0xf] %vm2507_vm15, %v2768_v29 }
0x3171   :  { %3900 = vmatpush3.xpose.msk.msra.mxu0 %vm224_vm6, %v4084_v52  ;;  %3901 = vmatprep.mubr.msk.f32.mxu0 %vm4208_vm5, %v4207_v9 }
0x3172   :  { %3904 = vmatprep.subr.mxu0 %v4207_v9 }
0x3174   :  { %3902 = vmatmul.mubr.msk.f32.vlgmr.msra.gmra.mxu0 %vm224_vm6, %v4879_v46 }
0x3175   :  { %3905 = vmatpush3.msra.mxu0 %v4872_v50  ;;  %3906 = vmatprep.mubr.msk.f32.mxu0 %vm4208_vm5, %v4207_v9 }
0x3176   :  { %3920 = vmatprep.subr.mxu0 %v4207_v9 }
0x3230   :  { %v2839_v35 = vpop.f32.mrf.mxu0 }
0x3231   :  { %3343 = vst.msk [vmem:[#allocation8 + $0x4] sm:$0xf] %vm3341_vm1, %v2839_v35 }
0x3232   :  { %v3887_v38 = vpop.f32.mrf.mxu0 }
0x3234   :  { %v3003_v23 = vpop.f32.mrf.mxu0 }
0x3235   :  { %v3004_v39 = vadd.f32 %v3003_v23, %v2933_v37 }
0x3236   :  { %v3903_v40 = vpop.f32.mrf.mxu0 }
0x3237   :  { %v3007_v24 = vsel %vm2507_vm15, %v3004_v39, -inf }
0x3238   :  { %3008 = vmax.xlane.f32.xlu1 %v3007_v24 }
0x32c1   :  { %v3009_v7 = vpop.xlane.xlu1 %3008 }
0x32c2   :  { %v3010_v55 = vsub.f32 %v3004_v39, %v3009_v7 }
0x32c4   :  { %v3011_v13 = vmul.f32 1.442695, %v3010_v55 }
0x32c6   :  { %4085 = vpow2.f32 %v3011_v13 }
0x32d3   :  { %v4086_v34 = vpop.eup %4085 }
0x32d4   :  { %v3013_v45 = vsel %vm2507_vm15, %v4086_v34, 0.0 }
0x32d5   :  { %3014 = vadd.xlane.f32.xlu0 %v3013_v45 }
0x335e   :  { %v3015_v6 = vpop.xlane.xlu0 %3014 }
0x335f   :  { %4087 = vrcp.f32 %v3015_v6 }
0x3360   :  { %4089 = vtanh.f32 %v4931_v12 }
0x336c   :  { %v4088_v48 = vpop.eup %4087 }
0x336d   :  { %v3017_v26 = vmul.f32 %v4088_v48, %v4086_v34  ;;  %v4090_v50 = vpop.eup %4089 }
0x336f   :  { %3907 = vmatmul.mubr.msk.f32.vlgmr.msra.gmra.mxu0 %vm2520_vm0, %v3017_v26  ;;  %3348 = vst.msk [vmem:[#allocation9 + $0x8] sm:$0xf] %vm2507_vm15, %v3017_v26 }
0x3370   :  { %3921 = vmatpush3.xpose.msk.msra.mxu0 %vm224_vm6, %v4090_v50  ;;  %3922 = vmatprep.mubr.msk.f32.mxu0 %vm4208_vm5, %v4207_v9 }
0x3371   :  { %3925 = vmatprep.subr.mxu0 %v4207_v9 }
0x3373   :  { %3923 = vmatmul.mubr.msk.f32.vlgmr.msra.gmra.mxu0 %vm224_vm6, %v4879_v46 }
0x3374   :  { %3926 = vmatpush3.msra.mxu0 %v4875_v53  ;;  %3927 = vmatprep.mubr.msk.f32.mxu0 %vm4208_vm5, %v4207_v9 }
0x342f   :  { %v3088_v8 = vpop.f32.mrf.mxu0 }
0x3430   :  { %3344 = vst.msk [vmem:[#allocation8 + $0x8] sm:$0xf] %vm3341_vm1, %v3088_v8 }
0x3431   :  { %v3908_v41 = vpop.f32.mrf.mxu0 }
0x3433   :  { %v3252_v42 = vpop.f32.mrf.mxu0 }
0x3434   :  { %v3253_v25 = vadd.f32 %v3252_v42, %v3182_v33 }
0x3435   :  { %v3924_v58 = vpop.f32.mrf.mxu0 }
0x3436   :  { %v3256_v43 = vsel %vm2507_vm15, %v3253_v25, -inf }
0x3437   :  { %3257 = vmax.xlane.f32.xlu1 %v3256_v43 }
0x34c0   :  { %v3258_v46 = vpop.xlane.xlu1 %3257 }
0x34c1   :  { %v3259_v59 = vsub.f32 %v3253_v25, %v3258_v46 }
0x34c3   :  { %v3260_v53 = vmul.f32 1.442695, %v3259_v59 }
0x34c5   :  { %4091 = vpow2.f32 %v3260_v53 }
0x34d2   :  { %v4092_v36 = vpop.eup %4091 }
0x34d3   :  { %v3262_v9 = vsel %vm2507_vm15, %v4092_v36, 0.0 }
0x34d4   :  { %3263 = vadd.xlane.f32.xlu0 %v3262_v9 }
0x355d   :  { %v3264_v57 = vpop.xlane.xlu0 %3263 }
0x355e   :  { %4093 = vrcp.f32 %v3264_v57 }
0x356b   :  { %v4094_v44 = vpop.eup %4093 }
0x356c   :  { %v3266_v60 = vmul.f32 %v4094_v44, %v4092_v36 }
0x356e   :  { %3928 = vmatmul.mubr.msk.f32.vlgmr.msra.gmra.mxu0 %vm2520_vm0, %v3266_v60  ;;  %3349 = vst.msk [vmem:[#allocation9 + $0xc] sm:$0xf] %vm2507_vm15, %v3266_v60 }
0x356f   :  { %4166 = shalt.err (!%p4163_p5)
}
0x3570   :  { %s4212_s10 = smov 4   ;;  %s4213_s29 = smov [#allocation8]  }
0x3571   :  { %3373 = dma.vmem_to_hbm [thread:$0]  %s3368_s2, 256, %s5012_s14, [#allocation10], %s4209_s4, %s4209_s4, %s4212_s10  }
0x3572   :  { %s3355_s30 = sshll.u32 %s4213_s29, 4  ;;  %s3356_s30 = int_to_ptr.vmem [resolvable:$true] %s3355_s30 }
0x3573   :  { %s4175_s15 = scalar_lea.vmem %s3356_s30, 256  ;;  %p4180_p7 = scmp.lt.s32.totalorder %s3356_s30, %s3356_s30 }
0x3574   :  { %p4176_p6 = scmp.ne.s32.totalorder %s3356_s30, %s4175_s15  ;;  %p4181_p8 = scmp.lt.s32.totalorder %s4175_s15, %s4175_s15 }
0x3576   :  { %p4182_p9 = por %p4181_p8, %p4180_p7 }
0x3578   :  { %p4183_p10 = pnand %p4182_p9, %p4176_p6 }
0x362e   :  { %v3337_v32 = vpop.f32.mrf.mxu0 }
0x362f   :  { %3345 = vst.msk [vmem:[#allocation8 + $0xc] sm:$0xf] %vm3341_vm1, %v3337_v32 }
0x3630   :  { %v3929_v61 = vpop.f32.mrf.mxu0 }
0x3631   :  { %4186 = shalt.err (!%p4183_p10)
}
0x3632   :  { %3361 = dma.vmem_to_hbm [thread:$0]  %s3356_s30, 256, %s5011_s13, [#allocation4], %s4209_s4, %s4209_s4, %s4212_s10  }
0x3633   :  { %4199 = dma.done.wait [#allocation4], 256  }
0x3634   :  { %4200 = vsyncadd [#allocation4], 4294967040 }
0x3635   :  { %4201 = dma.done.wait [#allocation10], 256  }
0x3636   :  { %4202 = vsyncadd [#allocation10], 4294967040 }
0x3637   :  { %3380 = vsyncpa [#allocation3], 1 }
0x3638   :  { %3381 = vsyncpa [#allocation6], 1 }
0x3639   :  { %3382 = vsyncpa [#allocation4], 1 }
0x363a   :  { %3383 = vsyncpa [#allocation10], 1 }

</bundles_post_ra>
